<compile_context>
chip_gen: v5e
topology: v5e:2x2
jax: 0.10.0
libtpu: 0.0.40
codegen_flags: <defaults>
</compile_context>

<pallas_src>
import jax
import jax.numpy as jnp
from jax.experimental import pallas as pl
from jax.experimental.pallas import tpu as pltpu

EPS = 1e-5


def bn_relu_kernel(x_ref, gamma_ref, beta_ref, o_ref):
    # x_ref: (TC, L) float32 ; gamma_ref / beta_ref: (TC, 1) float32
    x = x_ref[...]
    L = x.shape[1]
    inv_L = 1.0 / L

    # Per-channel batch statistics in one streaming pass over x.
    s1 = jnp.sum(x, axis=1, keepdims=True)
    s2 = jnp.sum(x * x, axis=1, keepdims=True)
    mean = s1 * inv_L
    # Biased variance (matches PyTorch BN training-mode normalization);
    # clamp at 0 to guard against cancellation in E[x^2] - mean^2.
    var = jnp.maximum(s2 * inv_L - mean * mean, 0.0)
    inv_std = jax.lax.rsqrt(var + EPS)

    # Fold normalization + affine into per-channel scale / bias.
    a = gamma_ref[...] * inv_std          # (TC, 1)
    b = beta_ref[...] - mean * a          # (TC, 1)

    # Apply: one mul, one add, one max over the full tile, fused ReLU.
    o_ref[...] = jnp.maximum(x * a + b, 0.0).astype(o_ref.dtype)


def batchnorm_relu(x_nchw, gamma, beta, *, channel_block=240):
    """x_nchw: (N, C, H, W) float32; gamma/beta: (C,) float32."""
    N, C, H, W = x_nchw.shape
    L = N * H * W
    assert C % channel_block == 0 and channel_block % 8 == 0

    # (N, C, H, W) -> (C, N, H, W) -> (C, L). With N=1 this is layout-free.
    x2d = jnp.transpose(x_nchw, (1, 0, 2, 3)).reshape(C, L)
    gamma2d = gamma.reshape(C, 1).astype(jnp.float32)
    beta2d = beta.reshape(C, 1).astype(jnp.float32)

    grid = (C // channel_block,)

    out2d = pl.pallas_call(
        bn_relu_kernel,
        out_shape=jax.ShapeDtypeStruct((C, L), x2d.dtype),
        grid=grid,
        in_specs=[
            pl.BlockSpec((channel_block, L), lambda i: (i, 0)),
            pl.BlockSpec((channel_block, 1), lambda i: (i, 0)),
            pl.BlockSpec((channel_block, 1), lambda i: (i, 0)),
        ],
        out_specs=pl.BlockSpec((channel_block, L), lambda i: (i, 0)),
        input_output_aliases={0: 0},
        compiler_params=pltpu.CompilerParams(
            dimension_semantics=("parallel",)
        ),
    )(x2d, gamma2d, beta2d)

    # (C, L) -> (C, N, H, W) -> (N, C, H, W)
    return jnp.transpose(out2d.reshape(C, N, H, W), (1, 0, 2, 3))


def reference(x_nchw, gamma, beta):
    mean = jnp.mean(x_nchw, axis=(0, 2, 3), keepdims=True)
    var = jnp.mean((x_nchw - mean) ** 2, axis=(0, 2, 3), keepdims=True)
    y = (x_nchw - mean) * jax.lax.rsqrt(var + EPS)
    y = y * gamma.reshape(1, -1, 1, 1) + beta.reshape(1, -1, 1, 1)
    return jnp.maximum(y, 0.0)


if __name__ == "__main__":
    key = jax.random.PRNGKey(0)
    kx, kg, kb = jax.random.split(key, 3)

    N, C, H, W = 1, 960, 14, 14  # shape implied by BatchNorm2d(960) and x295
    x = jax.random.normal(kx, (N, C, H, W), dtype=jnp.float32)

    # Deterministic, non-trivial affine parameters.
    gamma = 1.0 + 0.1 * jax.random.normal(kg, (C,), dtype=jnp.float32)
    beta = 0.1 * jax.random.normal(kb, (C,), dtype=jnp.float32)

    out = batchnorm_relu(x, gamma, beta)
    out = jax.block_until_ready(out)

    ref = reference(x, gamma, beta)
    assert out.shape == (N, C, H, W)
    assert jnp.max(jnp.abs(out - ref)) < 1e-4, "mismatch vs reference"

    # TODO(synk): running_mean/running_var updates (track_running_stats) are
    # not reproduced; only the forward output is required.
    print("KERNEL_OK")
</pallas_src>

<mosaic_0001>
module attributes {stable_mosaic.version = 11 : i64} {
  func.func @bn_relu_kernel(%arg0: i32, %arg1: memref<240x196xf32, #tpu.memory_space<vmem>>, %arg2: memref<240x1xf32, #tpu.memory_space<vmem>>, %arg3: memref<240x1xf32, #tpu.memory_space<vmem>>, %arg4: memref<240x196xf32, #tpu.memory_space<vmem>>) attributes {dimension_semantics = [#tpu.dimension_semantics<parallel>], iteration_bounds = array<i64: 4>, scalar_prefetch = 0 : i64, scratch_operands = 0 : i64, tpu.core_type = #tpu.core_type<tc>, window_params = [{transform_indices = @transform_0, window_bounds = array<i64: 240, 196>}, {transform_indices = @transform_1, window_bounds = array<i64: 240, 1>}, {transform_indices = @transform_2, window_bounds = array<i64: 240, 1>}, {transform_indices = @transform_3, window_bounds = array<i64: 240, 196>}]} {
    %c0 = arith.constant 0 : index
    %c0_0 = arith.constant 0 : index
    %0 = vector.load %arg1[%c0, %c0_0] : memref<240x196xf32, #tpu.memory_space<vmem>>, vector<240x196xf32>
    %cst = arith.constant dense<0.000000e+00> : vector<240xf32>
    %1 = vector.multi_reduction <add>, %0, %cst [1] : vector<240x196xf32> to vector<240xf32>
    %2 = vector.shape_cast %1 : vector<240xf32> to vector<240x1xf32>
    %3 = arith.mulf %0, %0 : vector<240x196xf32>
    %cst_1 = arith.constant dense<0.000000e+00> : vector<240xf32>
    %4 = vector.multi_reduction <add>, %3, %cst_1 [1] : vector<240x196xf32> to vector<240xf32>
    %5 = vector.shape_cast %4 : vector<240xf32> to vector<240x1xf32>
    %cst_2 = arith.constant 0.00510204071 : f32
    %6 = vector.broadcast %cst_2 : f32 to vector<240x1xf32>
    %7 = arith.mulf %2, %6 : vector<240x1xf32>
    %cst_3 = arith.constant 0.00510204071 : f32
    %8 = vector.broadcast %cst_3 : f32 to vector<240x1xf32>
    %9 = arith.mulf %5, %8 : vector<240x1xf32>
    %10 = arith.mulf %7, %7 : vector<240x1xf32>
    %11 = arith.subf %9, %10 : vector<240x1xf32>
    %cst_4 = arith.constant 0.000000e+00 : f32
    %12 = vector.broadcast %cst_4 : f32 to vector<240x1xf32>
    %13 = arith.maximumf %11, %12 : vector<240x1xf32>
    %cst_5 = arith.constant 9.99999974E-6 : f32
    %14 = vector.broadcast %cst_5 : f32 to vector<240x1xf32>
    %15 = arith.addf %13, %14 : vector<240x1xf32>
    %16 = math.rsqrt %15 : vector<240x1xf32>
    %c0_6 = arith.constant 0 : index
    %c0_7 = arith.constant 0 : index
    %17 = vector.load %arg2[%c0_6, %c0_7] : memref<240x1xf32, #tpu.memory_space<vmem>>, vector<240x1xf32>
    %18 = arith.mulf %17, %16 : vector<240x1xf32>
    %c0_8 = arith.constant 0 : index
    %c0_9 = arith.constant 0 : index
    %19 = vector.load %arg3[%c0_8, %c0_9] : memref<240x1xf32, #tpu.memory_space<vmem>>, vector<240x1xf32>
    %20 = arith.mulf %7, %18 : vector<240x1xf32>
    %21 = arith.subf %19, %20 : vector<240x1xf32>
    %22 = vector.broadcast %18 : vector<240x1xf32> to vector<240x196xf32>
    %23 = arith.mulf %0, %22 : vector<240x196xf32>
    %24 = vector.broadcast %21 : vector<240x1xf32> to vector<240x196xf32>
    %25 = arith.addf %23, %24 : vector<240x196xf32>
    %cst_10 = arith.constant 0.000000e+00 : f32
    %26 = vector.broadcast %cst_10 : f32 to vector<240x196xf32>
    %27 = arith.maximumf %25, %26 : vector<240x196xf32>
    %c0_11 = arith.constant 0 : index
    %c0_12 = arith.constant 0 : index
    %28 = vector.load %arg4[%c0_11, %c0_12] : memref<240x196xf32, #tpu.memory_space<vmem>>, vector<240x196xf32>
    tpu.vector_store %arg4[%c0_11, %c0_12], %27 {strides = array<i32>} : memref<240x196xf32, #tpu.memory_space<vmem>>, vector<240x196xf32>,
    return
  }
  func.func @transform_0(%arg0: i32) -> (i32, i32) {
    %c0_i32 = arith.constant 0 : i32
    %c0_i32_0 = arith.constant 0 : i32
    return %arg0, %c0_i32 : i32, i32
  }
  func.func @transform_1(%arg0: i32) -> (i32, i32) {
    %c0_i32 = arith.constant 0 : i32
    %c0_i32_0 = arith.constant 0 : i32
    return %arg0, %c0_i32 : i32, i32
  }
  func.func @transform_2(%arg0: i32) -> (i32, i32) {
    %c0_i32 = arith.constant 0 : i32
    %c0_i32_0 = arith.constant 0 : i32
    return %arg0, %c0_i32 : i32, i32
  }
  func.func @transform_3(%arg0: i32) -> (i32, i32) {
    %c0_i32 = arith.constant 0 : i32
    %c0_i32_0 = arith.constant 0 : i32
    return %arg0, %c0_i32 : i32, i32
  }
}

</mosaic_0001>

<bundles_post_ra>
// kernel: tpu_custom_call.1
= control target key start
LH: loop header
LB: loop body
LE: loop exit
PB: predicated region body
PF: predicated region fallthrough
CT: control target
= control target key end

     0   :  { %s1954_s12 = smov 0   ;;  %s3640_s0 = inlined_call_operand.vmem [shape: f32[960,196], index: 0, kind: input, shape index: {}, may-alias: {0,3}]   ;;  %s3641_s1 = inlined_call_operand.vmem [shape: f32[960,1], index: 1, kind: input, shape index: {}]   ;;  %s3642_s2 = inlined_call_operand.vmem [shape: f32[960,1], index: 2, kind: input, shape index: {}]   ;;  %s3643_s3 = inlined_call_operand.vmem [shape: f32[960,196], index: 3, kind: output, shape index: {}, may-alias: {0,3}]  }
   0x1 LB: > { %s1836_s13 = sadd.s32 4294967295, %s1931_s12   ;;  %p1840_p0 = scmp.ge.s32.totalorder %s1931_s12, 1  ;;  %s1931_s12 = sphi %s1954_s12, %s13_s12  }
   0x2   : > { %p161_p1 = scmp.lt.s32.totalorder %s1931_s12, 5 }
   0x4   : > { %p162_p2 = pnand %p1840_p0, %p161_p1 }
   0x6   : > { %165 = sbr.rel (%p162_p2) target bundleno = 544 (0x220), region = 32 }
   0xb   : > { %s197_s14 = smul.u32 30, %s1836_s13  ;;  %vm283_vm0 = vcmask 556032  }
   0xd   : > { %p198_p3 = scmp.lt.s32.totalorder %s197_s14, 119 }
   0xf   : > { %s3928_s14 = smov (!%p198_p3, %s197_s14), 119 }
  0x10   : > { %s1849_s15 = sshll.u32 %s3928_s14, 4  ;;  %s1843_s19 = sshll.u32 %s3928_s14, 3 }
  0x11   : > { %s1970_s18 = scalar_lea.vmem %s3640_s0, %s1849_s15  ;;  %s2670_s22 = scalar_lea.vmem %s3641_s1, %s1843_s19 }
  0x12   : > { %v1973_v0 = vld [vmem:[%s1970_s18 + $0x40] sm:$0xff]  ;;  %v1976_v1 = vld [vmem:[%s1970_s18 + $0x48] sm:$0xff]  ;;  %v1998_v10 = vld [vmem:[%s1970_s18 + $0x58] sm:$0xff]  ;;  %s3258_s25 = scalar_lea.vmem %s3642_s2, %s1843_s19  ;;  %s3423_s28 = scalar_lea.vmem %s3643_s3, %s1849_s15 }
  0x13   : > { %3736 = vst [vmem:[#allocation2_spill] sm:$0xff] %v1973_v0  ;;  %v1979_v2 = vld [vmem:[%s1970_s18 + $0x20] sm:$0xff]  ;;  %v300_v3 = vsel %vm283_vm0, %v1976_v1, 0.0  ;;  %v1984_v4 = vld [vmem:[%s1970_s18 + $0x28] sm:$0xff]  ;;  %v2003_v13 = vld [vmem:[%s1970_s18 + $0x38] sm:$0xff]  ;;  %v304_v16 = vsel %vm283_vm0, %v1998_v10, 0.0 }
  0x14   : > { %3737 = vst [vmem:[#allocation3_spill] sm:$0xff] %v1976_v1  ;;  %v1987_v5 = vld [vmem:[%s1970_s18] sm:$0xff]  ;;  %v1990_v6 = vld [vmem:[%s1970_s18 + $0x8] sm:$0xff]  ;;  %v301_v7 = vadd.f32 %v300_v3, %v1973_v0  ;;  %v292_v8 = vsel %vm283_vm0, %v1984_v4, 0.0  ;;  %v2006_v14 = vld [vmem:[%s1970_s18 + $0x18] sm:$0xff]  ;;  %v296_v18 = vsel %vm283_vm0, %v2003_v13, 0.0 }
  0x15   : > { %3738 = vst [vmem:[#allocation4_spill] sm:$0xff] %v1987_v5  ;;  %v284_v9 = vsel %vm283_vm0, %v1990_v6, 0.0  ;;  %v293_v11 = vadd.f32 %v292_v8, %v1979_v2  ;;  %v2009_v15 = vld [vmem:[%s1970_s18 + $0x50] sm:$0xff]  ;;  %v288_v20 = vsel %vm283_vm0, %v2006_v14, 0.0  ;;  %v2027_v24 = vld [vmem:[%s1970_s18 + $0x88] sm:$0xff]  ;;  %v2030_v25 = vld [vmem:[%s1970_s18 + $0x78] sm:$0xff] }
  0x16   : > { %3739 = vst [vmem:[#allocation5_spill] sm:$0xff] %v1990_v6  ;;  %v285_v12 = vadd.f32 %v284_v9, %v1987_v5  ;;  %302 = vadd.xlane.f32.xlu2 %v301_v7  ;;  %v2014_v17 = vld [vmem:[%s1970_s18 + $0x30] sm:$0xff]  ;;  %v305_v21 = vadd.f32 %v304_v16, %v2009_v15  ;;  %v2033_v26 = vld [vmem:[%s1970_s18 + $0x68] sm:$0xff]  ;;  %v2036_v27 = vld [vmem:[%s1970_s18 + $0x80] sm:$0xff]  ;;  %v316_v28 = vsel %vm283_vm0, %v2027_v24, 0.0  ;;  %v312_v30 = vsel %vm283_vm0, %v2030_v25, 0.0 }
  0x17   : > { %3740 = vst [vmem:[#allocation6_spill] sm:$0xff] %v1998_v10  ;;  %294 = vadd.xlane.f32.xlu1 %v293_v11  ;;  %v2019_v19 = vld [vmem:[%s1970_s18 + $0x10] sm:$0xff]  ;;  %v297_v22 = vadd.f32 %v296_v18, %v2014_v17  ;;  %v2046_v31 = vld [vmem:[%s1970_s18 + $0x60] sm:$0xff]  ;;  %v308_v32 = vsel %vm283_vm0, %v2033_v26, 0.0  ;;  %v317_v33 = vadd.f32 %v316_v28, %v2036_v27  ;;  %v2054_v36 = vld [vmem:[%s1970_s18 + $0xb8] sm:$0xff] }
  0x18   : > { %3741 = vst [vmem:[#allocation7_spill] sm:$0xff] %v2003_v13  ;;  %286 = vadd.xlane.f32.xlu0 %v285_v12  ;;  %v289_v23 = vadd.f32 %v288_v20, %v2019_v19  ;;  %v2041_v29 = vld [vmem:[%s1970_s18 + $0x70] sm:$0xff]  ;;  %v309_v35 = vadd.f32 %v308_v32, %v2046_v31  ;;  %v2057_v37 = vld [vmem:[%s1970_s18 + $0xa8] sm:$0xff]  ;;  %v2060_v38 = vld [vmem:[%s1970_s18 + $0x98] sm:$0xff]  ;;  %v328_v40 = vsel %vm283_vm0, %v2054_v36, 0.0 }
  0x19   : > { %3742 = vst [vmem:[#allocation8_spill] sm:$0xff] %v2006_v14  ;;  %v313_v34 = vadd.f32 %v312_v30, %v2041_v29  ;;  %v2063_v39 = vld [vmem:[%s1970_s18 + $0xb0] sm:$0xff]  ;;  %v2068_v41 = vld [vmem:[%s1970_s18 + $0xa0] sm:$0xff]  ;;  %v324_v42 = vsel %vm283_vm0, %v2057_v37, 0.0  ;;  %v320_v44 = vsel %vm283_vm0, %v2060_v38, 0.0  ;;  %v2081_v48 = vld [vmem:[%s1970_s18 + $0xe8] sm:$0xff] }
  0x1a   : > { %3743 = vst [vmem:[#allocation9_spill] sm:$0xff] %v2009_v15  ;;  %v2073_v43 = vld [vmem:[%s1970_s18 + $0x90] sm:$0xff]  ;;  %v329_v45 = vadd.f32 %v328_v40, %v2063_v39  ;;  %v325_v46 = vadd.f32 %v324_v42, %v2068_v41  ;;  %v2084_v49 = vld [vmem:[%s1970_s18 + $0xd8] sm:$0xff]  ;;  %v2087_v50 = vld [vmem:[%s1970_s18 + $0xc8] sm:$0xff]  ;;  %v340_v52 = vsel %vm283_vm0, %v2081_v48, 0.0 }
  0x1b   : > { %3744 = vst [vmem:[#allocation10_spill] sm:$0xff] %v2014_v17  ;;  %v321_v47 = vadd.f32 %v320_v44, %v2073_v43  ;;  %v2090_v51 = vld [vmem:[%s1970_s18 + $0xe0] sm:$0xff]  ;;  %v2095_v53 = vld [vmem:[%s1970_s18 + $0xd0] sm:$0xff]  ;;  %v336_v54 = vsel %vm283_vm0, %v2084_v49, 0.0  ;;  %v332_v56 = vsel %vm283_vm0, %v2087_v50, 0.0  ;;  %v2108_v60 = vld [vmem:[%s1970_s18 + $0x118] sm:$0xff] }
  0x1c   : > { %3745 = vst [vmem:[#allocation11_spill] sm:$0xff] %v2019_v19  ;;  %v2100_v55 = vld [vmem:[%s1970_s18 + $0xc0] sm:$0xff]  ;;  %v341_v57 = vadd.f32 %v340_v52, %v2090_v51  ;;  %v337_v58 = vadd.f32 %v336_v54, %v2095_v53  ;;  %v2111_v61 = vld [vmem:[%s1970_s18 + $0x108] sm:$0xff]  ;;  %v2114_v62 = vld [vmem:[%s1970_s18 + $0xf8] sm:$0xff]  ;;  %v352_v3 = vsel %vm283_vm0, %v2108_v60, 0.0 }
  0x1d   : > { %3746 = vst [vmem:[#allocation12_spill] sm:$0xff] %v2027_v24  ;;  %v333_v59 = vadd.f32 %v332_v56, %v2100_v55  ;;  %v2117_v63 = vld [vmem:[%s1970_s18 + $0x110] sm:$0xff]  ;;  %v2122_v7 = vld [vmem:[%s1970_s18 + $0x100] sm:$0xff]  ;;  %v348_v8 = vsel %vm283_vm0, %v2111_v61, 0.0  ;;  %v344_v11 = vsel %vm283_vm0, %v2114_v62, 0.0  ;;  %v2135_v20 = vld [vmem:[%s1970_s18 + $0x148] sm:$0xff] }
  0x1e   : > { %3747 = vst [vmem:[#allocation13_spill] sm:$0xff] %v2030_v25  ;;  %306 = vadd.xlane.f32.xlu2 %v305_v21  ;;  %v2127_v9 = vld [vmem:[%s1970_s18 + $0xf0] sm:$0xff]  ;;  %v353_v12 = vadd.f32 %v352_v3, %v2117_v63  ;;  %v349_v16 = vadd.f32 %v348_v8, %v2122_v7  ;;  %v2138_v21 = vld [vmem:[%s1970_s18 + $0x138] sm:$0xff]  ;;  %v364_v28 = vsel %vm283_vm0, %v2135_v20, 0.0  ;;  %v2176_v54 = vld [vmem:[%s1970_s18 + $0x160] sm:$0xff] }
  0x1f   : > { %3748 = vst [vmem:[#allocation14_spill] sm:$0xff] %v2033_v26  ;;  %298 = vadd.xlane.f32.xlu1 %v297_v22  ;;  %v345_v18 = vadd.f32 %v344_v11, %v2127_v9  ;;  %v2141_v22 = vld [vmem:[%s1970_s18 + $0x128] sm:$0xff]  ;;  %v2149_v30 = vld [vmem:[%s1970_s18 + $0x130] sm:$0xff]  ;;  %v360_v32 = vsel %vm283_vm0, %v2138_v21, 0.0  ;;  %v2162_v44 = vld [vmem:[%s1970_s18 + $0x178] sm:$0xff] }
  0x20   : > { %290 = vadd.xlane.f32.xlu0 %v289_v23  ;;  %3749 = vst [vmem:[#allocation15_spill] sm:$0xff] %v2036_v27  ;;  %v2144_v23 = vld [vmem:[%s1970_s18 + $0x140] sm:$0xff]  ;;  %v361_v40 = vadd.f32 %v360_v32, %v2149_v30  ;;  %v376_v52 = vsel %vm283_vm0, %v2162_v44, 0.0  ;;  %v2189_v11 = vld [vmem:[%s1970_s18 + $0x1a8] sm:$0xff]  ;;  %v2203_v32 = vld [vmem:[%s1970_s18 + $0x190] sm:$0xff] }
  0x21   : > { %3750 = vst [vmem:[#allocation16_spill] sm:$0xff] %v2041_v29 }
  0x22   : > { %3751 = vst [vmem:[#allocation17_spill] sm:$0xff] %v2046_v31 }
  0x23   : > { %3752 = vst [vmem:[#allocation18_spill] sm:$0xff] %v2054_v36 }
  0x24   : > { %3753 = vst [vmem:[#allocation19_spill] sm:$0xff] %v2057_v37 }
  0x25   : > { %3754 = vst [vmem:[#allocation20_spill] sm:$0xff] %v2060_v38 }
  0x26   : > { %318 = vadd.xlane.f32.xlu2 %v317_v33  ;;  %3755 = vst [vmem:[#allocation21_spill] sm:$0xff] %v2063_v39  ;;  %v2154_v33 = vld [vmem:[%s1970_s18 + $0x120] sm:$0xff] }
  0x27   : > { %314 = vadd.xlane.f32.xlu1 %v313_v34  ;;  %3756 = vst [vmem:[#allocation22_spill] sm:$0xff] %v2068_v41  ;;  %v356_v34 = vsel %vm283_vm0, %v2141_v22, 0.0 }
  0x28   : > { %310 = vadd.xlane.f32.xlu0 %v309_v35  ;;  %3757 = vst [vmem:[#allocation23_spill] sm:$0xff] %v2073_v43  ;;  %v365_v35 = vadd.f32 %v364_v28, %v2144_v23  ;;  %v357_v42 = vadd.f32 %v356_v34, %v2154_v33  ;;  %v388_v28 = vsel %vm283_vm0, %v2189_v11, 0.0 }
  0x29   : > { %3758 = vst [vmem:[#allocation24_spill] sm:$0xff] %v2081_v48 }
  0x2a   : > { %3759 = vst [vmem:[#allocation25_spill] sm:$0xff] %v2084_v49 }
  0x2b   : > { %3760 = vst [vmem:[#allocation26_spill] sm:$0xff] %v2087_v50 }
  0x2c   : > { %3761 = vst [vmem:[#allocation27_spill] sm:$0xff] %v2090_v51 }
  0x2d   : > { %3762 = vst [vmem:[#allocation28_spill] sm:$0xff] %v2095_v53 }
  0x2e   : > { %330 = vadd.xlane.f32.xlu2 %v329_v45  ;;  %3763 = vst [vmem:[#allocation29_spill] sm:$0xff] %v2100_v55  ;;  %v2165_v45 = vld [vmem:[%s1970_s18 + $0x168] sm:$0xff] }
  0x2f   : > { %326 = vadd.xlane.f32.xlu1 %v325_v46  ;;  %3764 = vst [vmem:[#allocation30_spill] sm:$0xff] %v2108_v60  ;;  %v2168_v46 = vld [vmem:[%s1970_s18 + $0x158] sm:$0xff]  ;;  %v372_v56 = vsel %vm283_vm0, %v2165_v45, 0.0 }
  0x30   : > { %322 = vadd.xlane.f32.xlu0 %v321_v47  ;;  %3765 = vst [vmem:[#allocation31_spill] sm:$0xff] %v2111_v61  ;;  %v2171_v47 = vld [vmem:[%s1970_s18 + $0x170] sm:$0xff]  ;;  %v373_v3 = vadd.f32 %v372_v56, %v2176_v54 }
  0x31   : > { %3766 = vst [vmem:[#allocation32_spill] sm:$0xff] %v2114_v62 }
  0x32   : > { %3767 = vst [vmem:[#allocation33_spill] sm:$0xff] %v2117_v63 }
  0x33   : > { %3768 = vst [vmem:[#allocation34_spill] sm:$0xff] %v2122_v7 }
  0x34   : > { %3769 = vst [vmem:[#allocation35_spill] sm:$0xff] %v2127_v9 }
  0x35   : > { %3770 = vst [vmem:[#allocation36_spill] sm:$0xff] %v2135_v20 }
  0x36   : > { %342 = vadd.xlane.f32.xlu2 %v341_v57  ;;  %3771 = vst [vmem:[#allocation37_spill] sm:$0xff] %v2138_v21  ;;  %v2181_v57 = vld [vmem:[%s1970_s18 + $0x150] sm:$0xff] }
  0x37   : > { %338 = vadd.xlane.f32.xlu1 %v337_v58  ;;  %3772 = vst [vmem:[#allocation38_spill] sm:$0xff] %v2141_v22  ;;  %v368_v58 = vsel %vm283_vm0, %v2168_v46, 0.0 }
  0x38   : > { %334 = vadd.xlane.f32.xlu0 %v333_v59  ;;  %3773 = vst [vmem:[#allocation39_spill] sm:$0xff] %v2144_v23  ;;  %v377_v59 = vadd.f32 %v376_v52, %v2171_v47  ;;  %v369_v8 = vadd.f32 %v368_v58, %v2181_v57  ;;  %v2216_v58 = vld [vmem:[%s1970_s18 + $0x1d8] sm:$0xff] }
  0x39   : > { %3774 = vst [vmem:[#allocation40_spill] sm:$0xff] %v2149_v30 }
  0x3a   : > { %3775 = vst [vmem:[#allocation41_spill] sm:$0xff] %v2154_v33 }
  0x3b   : > { %3776 = vst [vmem:[#allocation42_spill] sm:$0xff] %v2162_v44 }
  0x3c   : > { %3777 = vst [vmem:[#allocation43_spill] sm:$0xff] %v2165_v45 }
  0x3d   : > { %3778 = vst [vmem:[#allocation44_spill] sm:$0xff] %v2168_v46 }
  0x3e   : > { %354 = vadd.xlane.f32.xlu2 %v353_v12  ;;  %3779 = vst [vmem:[#allocation45_spill] sm:$0xff] %v2171_v47  ;;  %v2192_v12 = vld [vmem:[%s1970_s18 + $0x198] sm:$0xff] }
  0x3f   : > { %350 = vadd.xlane.f32.xlu1 %v349_v16  ;;  %3780 = vst [vmem:[#allocation46_spill] sm:$0xff] %v2176_v54  ;;  %v2195_v16 = vld [vmem:[%s1970_s18 + $0x188] sm:$0xff]  ;;  %v384_v34 = vsel %vm283_vm0, %v2192_v12, 0.0 }
  0x40   : > { %346 = vadd.xlane.f32.xlu0 %v345_v18  ;;  %3781 = vst [vmem:[#allocation47_spill] sm:$0xff] %v2181_v57  ;;  %v2198_v18 = vld [vmem:[%s1970_s18 + $0x1a0] sm:$0xff]  ;;  %v385_v52 = vadd.f32 %v384_v34, %v2203_v32  ;;  %v2235_v34 = vld [vmem:[%s1970_s18 + $0x1b0] sm:$0xff] }
  0x41   : > { %3782 = vst [vmem:[#allocation48_spill] sm:$0xff] %v2189_v11 }
  0x42   : > { %3783 = vst [vmem:[#allocation49_spill] sm:$0xff] %v2192_v12  ;;  %v2230_v12 = vld [vmem:[%s1970_s18 + $0x1c0] sm:$0xff] }
  0x43   : > { %3784 = vst [vmem:[#allocation50_spill] sm:$0xff] %v2195_v16 }
  0x44   : > { %3785 = vst [vmem:[#allocation51_spill] sm:$0xff] %v2198_v18 }
  0x45   : > { %3786 = vst [vmem:[#allocation52_spill] sm:$0xff] %v2203_v32  ;;  %v408_v32 = vmul.f32 %v1979_v2, %v1979_v2  ;;  %v415_v2 = vmul.f32 %v1998_v10, %v1998_v10 }
  0x46   : > { %366 = vadd.xlane.f32.xlu2 %v365_v35  ;;  %v2208_v35 = vld [vmem:[%s1970_s18 + $0x180] sm:$0xff]  ;;  %3788 = vst [vmem:[#allocation54_spill] sm:$0xff] %v2216_v58 }
  0x47   : > { %362 = vadd.xlane.f32.xlu1 %v361_v40  ;;  %3787 = vst [vmem:[#allocation53_spill] sm:$0xff] %v2208_v35  ;;  %v380_v40 = vsel %vm283_vm0, %v2195_v16, 0.0  ;;  %v400_v16 = vsel %vm283_vm0, %v2216_v58, 0.0  ;;  %v407_v58 = vmul.f32 %v2006_v14, %v2006_v14 }
  0x48   : > { %358 = vadd.xlane.f32.xlu0 %v357_v42  ;;  %v389_v42 = vadd.f32 %v388_v28, %v2198_v18  ;;  %v381_v56 = vadd.f32 %v380_v40, %v2208_v35  ;;  %3792 = vst [vmem:[#allocation58_spill] sm:$0xff] %v2230_v12 }
  0x49   : > { %3793 = vst [vmem:[#allocation59_spill] sm:$0xff] %v2235_v34 }
  0x4e   : > { %378 = vadd.xlane.f32.xlu2 %v377_v59  ;;  %v2219_v59 = vld [vmem:[%s1970_s18 + $0x1c8] sm:$0xff] }
  0x4f   : > { %374 = vadd.xlane.f32.xlu1 %v373_v3  ;;  %3789 = vst [vmem:[#allocation55_spill] sm:$0xff] %v2219_v59  ;;  %v2222_v3 = vld [vmem:[%s1970_s18 + $0x1b8] sm:$0xff]  ;;  %v396_v28 = vsel %vm283_vm0, %v2219_v59, 0.0  ;;  %v405_v59 = vmul.f32 %v1990_v6, %v1990_v6 }
  0x50   : > { %370 = vadd.xlane.f32.xlu0 %v369_v8  ;;  %3790 = vst [vmem:[#allocation56_spill] sm:$0xff] %v2222_v3  ;;  %v2225_v8 = vld [vmem:[%s1970_s18 + $0x1d0] sm:$0xff]  ;;  %v392_v40 = vsel %vm283_vm0, %v2222_v3, 0.0 }
  0x51   : > { %3791 = vst [vmem:[#allocation57_spill] sm:$0xff] %v2225_v8  ;;  %v401_v35 = vadd.f32 %v400_v16, %v2225_v8  ;;  %v464_v14 = vsel %vm283_vm0, %v405_v59, 0.0 }
  0x56   : > { %390 = vadd.xlane.f32.xlu2 %v389_v42  ;;  %v397_v42 = vadd.f32 %v396_v28, %v2230_v12  ;;  %v406_v28 = vmul.f32 %v2019_v19, %v2019_v19 }
  0x57   : > { %386 = vadd.xlane.f32.xlu1 %v385_v52  ;;  %v393_v52 = vadd.f32 %v392_v40, %v2235_v34  ;;  %v468_v40 = vsel %vm283_vm0, %v407_v58, 0.0  ;;  %v484_v58 = vsel %vm283_vm0, %v415_v2, 0.0  ;;  %v420_v2 = vmul.f32 %v2036_v27, %v2036_v27 }
  0x58   : > { %382 = vadd.xlane.f32.xlu0 %v381_v56  ;;  %v409_v56 = vmul.f32 %v1984_v4, %v1984_v4  ;;  %v404_v4 = vmul.f32 %v1987_v5, %v1987_v5  ;;  %v469_v6 = vadd.f32 %v468_v40, %v406_v28  ;;  %v421_v40 = vmul.f32 %v2027_v24, %v2027_v24 }
  0x5a   : > { %v472_v16 = vsel %vm283_vm0, %v409_v56, 0.0  ;;  %v414_v56 = vmul.f32 %v2009_v15, %v2009_v15 }
  0x5b   : > { %v473_v34 = vadd.f32 %v472_v16, %v408_v32  ;;  %v410_v32 = vmul.f32 %v2014_v17, %v2014_v17 }
  0x5c   : > { %v485_v28 = vadd.f32 %v484_v58, %v414_v56  ;;  %v416_v56 = vmul.f32 %v2046_v31, %v2046_v31 }
  0x5e   : > { %402 = vadd.xlane.f32.xlu2 %v401_v35  ;;  %v465_v35 = vadd.f32 %v464_v14, %v404_v4  ;;  %v412_v14 = vmul.f32 %v1973_v0, %v1973_v0 }
  0x5f   : > { %398 = vadd.xlane.f32.xlu1 %v397_v42  ;;  %v413_v42 = vmul.f32 %v1976_v1, %v1976_v1 }
  0x60   : > { %394 = vadd.xlane.f32.xlu0 %v393_v52  ;;  %v411_v52 = vmul.f32 %v2003_v13, %v2003_v13 }
  0x61   : > { %v480_v59 = vsel %vm283_vm0, %v413_v42, 0.0  ;;  %v496_v42 = vsel %vm283_vm0, %v421_v40, 0.0  ;;  %v426_v40 = vmul.f32 %v2063_v39, %v2063_v39 }
  0x62   : > { %v476_v16 = vsel %vm283_vm0, %v411_v52, 0.0  ;;  %v481_v4 = vadd.f32 %v480_v59, %v412_v14  ;;  %v418_v52 = vmul.f32 %v2041_v29, %v2041_v29 }
  0x66   : > { %474 = vadd.xlane.f32.xlu2 %v473_v34  ;;  %v477_v34 = vadd.f32 %v476_v16, %v410_v32  ;;  %v497_v32 = vadd.f32 %v496_v42, %v420_v2  ;;  %v422_v2 = vmul.f32 %v2073_v43, %v2073_v43 }
  0x67   : > { %470 = vadd.xlane.f32.xlu1 %v469_v6  ;;  %v419_v6 = vmul.f32 %v2030_v25, %v2030_v25 }
  0x68   : > { %466 = vadd.xlane.f32.xlu0 %v465_v35  ;;  %v417_v35 = vmul.f32 %v2033_v26, %v2033_v26 }
  0x69   : > { %v492_v58 = vsel %vm283_vm0, %v419_v6, 0.0 }
  0x6a   : > { %v488_v14 = vsel %vm283_vm0, %v417_v35, 0.0  ;;  %v493_v59 = vadd.f32 %v492_v58, %v418_v52  ;;  %v424_v35 = vmul.f32 %v2068_v41, %v2068_v41 }
  0x6b   : > { %v489_v16 = vadd.f32 %v488_v14, %v416_v56 }
  0x6e   : > { %486 = vadd.xlane.f32.xlu2 %v485_v28  ;;  %v427_v28 = vmul.f32 %v2054_v36, %v2054_v36 }
  0x6f   : > { %482 = vadd.xlane.f32.xlu1 %v481_v4  ;;  %v425_v4 = vmul.f32 %v2057_v37, %v2057_v37 }
  0x70   : > { %478 = vadd.xlane.f32.xlu0 %v477_v34  ;;  %v423_v34 = vmul.f32 %v2060_v38, %v2060_v38  ;;  %v508_v6 = vsel %vm283_vm0, %v427_v28, 0.0  ;;  %v432_v28 = vmul.f32 %v2090_v51, %v2090_v51 }
  0x71   : > { %v504_v42 = vsel %vm283_vm0, %v425_v4, 0.0  ;;  %v509_v56 = vadd.f32 %v508_v6, %v426_v40  ;;  %v428_v40 = vmul.f32 %v2100_v55, %v2100_v55 }
  0x72   : > { %v500_v52 = vsel %vm283_vm0, %v423_v34, 0.0  ;;  %v505_v58 = vadd.f32 %v504_v42, %v424_v35  ;;  %v430_v34 = vmul.f32 %v2095_v53, %v2095_v53 }
  0x73   : > { %v501_v14 = vadd.f32 %v500_v52, %v422_v2 }
  0x76   : > { %498 = vadd.xlane.f32.xlu2 %v497_v32  ;;  %v433_v32 = vmul.f32 %v2081_v48, %v2081_v48 }
  0x77   : > { %494 = vadd.xlane.f32.xlu1 %v493_v59  ;;  %v431_v59 = vmul.f32 %v2084_v49, %v2084_v49 }
  0x78   : > { %490 = vadd.xlane.f32.xlu0 %v489_v16  ;;  %v429_v16 = vmul.f32 %v2087_v50, %v2087_v50  ;;  %v520_v4 = vsel %vm283_vm0, %v433_v32, 0.0  ;;  %v438_v32 = vmul.f32 %v2117_v63, %v2117_v63 }
  0x79   : > { %v516_v6 = vsel %vm283_vm0, %v431_v59, 0.0  ;;  %v521_v2 = vadd.f32 %v520_v4, %v432_v28  ;;  %v434_v28 = vmul.f32 %v2127_v9, %v2127_v9 }
  0x7a   : > { %v512_v35 = vsel %vm283_vm0, %v429_v16, 0.0  ;;  %v517_v42 = vadd.f32 %v516_v6, %v430_v34  ;;  %v436_v16 = vmul.f32 %v2122_v7, %v2122_v7 }
  0x7b   : > { %v513_v52 = vadd.f32 %v512_v35, %v428_v40 }
  0x7e   : > { %510 = vadd.xlane.f32.xlu2 %v509_v56  ;;  %v439_v56 = vmul.f32 %v2108_v60, %v2108_v60 }
  0x7f   : > { %506 = vadd.xlane.f32.xlu1 %v505_v58  ;;  %v437_v58 = vmul.f32 %v2111_v61, %v2111_v61 }
  0x80   : > { %502 = vadd.xlane.f32.xlu0 %v501_v14  ;;  %v435_v14 = vmul.f32 %v2114_v62, %v2114_v62  ;;  %v532_v59 = vsel %vm283_vm0, %v439_v56, 0.0  ;;  %v445_v56 = vmul.f32 %v2135_v20, %v2135_v20  ;;  %v443_v62 = vmul.f32 %v2138_v21, %v2138_v21 }
  0x81   : > { %v528_v4 = vsel %vm283_vm0, %v437_v58, 0.0  ;;  %v441_v58 = vmul.f32 %v2141_v22, %v2141_v22  ;;  %v449_v21 = vmul.f32 %v2165_v45, %v2165_v45  ;;  %v3794_v45 = vld [vmem:[#allocation49_spill] sm:$0xff] }
  0x82   : > { %v524_v34 = vsel %vm283_vm0, %v435_v14, 0.0  ;;  %v444_v14 = vmul.f32 %v2144_v23, %v2144_v23  ;;  %v544_v9 = vsel %vm283_vm0, %v445_v56, 0.0  ;;  %v451_v56 = vmul.f32 %v2162_v44, %v2162_v44 }
  0x86   : > { %522 = vadd.xlane.f32.xlu2 %v521_v2  ;;  %v533_v2 = vadd.f32 %v532_v59, %v438_v32  ;;  %v442_v32 = vmul.f32 %v2149_v30, %v2149_v30  ;;  %v440_v59 = vmul.f32 %v2154_v33, %v2154_v33  ;;  %v556_v33 = vsel %vm283_vm0, %v451_v56, 0.0 }
  0x87   : > { %518 = vadd.xlane.f32.xlu1 %v517_v42  ;;  %v529_v42 = vadd.f32 %v528_v4, %v436_v16  ;;  %v540_v16 = vsel %vm283_vm0, %v443_v62, 0.0  ;;  %v447_v62 = vmul.f32 %v2168_v46, %v2168_v46  ;;  %v457_v56 = vmul.f32 %v2189_v11, %v2189_v11 }
  0x88   : > { %514 = vadd.xlane.f32.xlu0 %v513_v52  ;;  %v525_v52 = vadd.f32 %v524_v34, %v434_v28  ;;  %v536_v28 = vsel %vm283_vm0, %v441_v58, 0.0  ;;  %v450_v58 = vmul.f32 %v2171_v47, %v2171_v47 }
  0x89   : > { %v2332_v40 = vpop.xlane.xlu2 %302  ;;  %v537_v22 = vadd.f32 %v536_v28, %v440_v59  ;;  %v548_v59 = vsel %vm283_vm0, %v447_v62, 0.0  ;;  %v456_v62 = vmul.f32 %v2198_v18, %v2198_v18  ;;  %v568_v30 = vsel %vm283_vm0, %v457_v56, 0.0  ;;  %v3798_v56 = vld [vmem:[#allocation54_spill] sm:$0xff] }
  0x8a   : > { %v2334_v6 = vpop.xlane.xlu1 %294  ;;  %v463_v18 = vmul.f32 %v3798_v56, %v3798_v56  ;;  %v2450_v7 = vmul.f32 0.0051020407, %v2332_v40 }
  0x8b   : > { %v2336_v35 = vpop.xlane.xlu0 %286 }
  0x8c   : > { %v648_v43 = vmul.f32 %v2450_v7, %v2450_v7 }
  0x8e   : > { %534 = vadd.xlane.f32.xlu2 %v533_v2 }
  0x8f   : > { %530 = vadd.xlane.f32.xlu1 %v529_v42  ;;  %v545_v42 = vadd.f32 %v544_v9, %v444_v14  ;;  %v448_v9 = vmul.f32 %v2176_v54, %v2176_v54  ;;  %v446_v14 = vmul.f32 %v2181_v57, %v2181_v57  ;;  %v455_v54 = vmul.f32 %v3794_v45, %v3794_v45  ;;  %v3795_v57 = vld [vmem:[#allocation50_spill] sm:$0xff] }
  0x90   : > { %526 = vadd.xlane.f32.xlu0 %v525_v52  ;;  %v541_v52 = vadd.f32 %v540_v16, %v442_v32  ;;  %v552_v32 = vsel %vm283_vm0, %v449_v21, 0.0  ;;  %v453_v21 = vmul.f32 %v3795_v57, %v3795_v57 }
  0x91   : > { %v2353_v4 = vpop.xlane.xlu2 %306  ;;  %v549_v46 = vadd.f32 %v548_v59, %v446_v14 }
  0x92   : > { %v2355_v34 = vpop.xlane.xlu1 %298  ;;  %v560_v59 = vsel %vm283_vm0, %v453_v21, 0.0  ;;  %v462_v21 = vmul.f32 %v2225_v8, %v2225_v8  ;;  %v2453_v50 = vmul.f32 0.0051020407, %v2353_v4 }
  0x93   : > { %v2357_v2 = vpop.xlane.xlu0 %290  ;;  %v2456_v55 = vmul.f32 0.0051020407, %v2355_v34 }
  0x94   : > { %3801 = vst [vmem:[#allocation60_spill] sm:$0xff] %v2453_v50 }
  0x95   : > { %v647_v63 = vmul.f32 %v2456_v55, %v2456_v55 }
  0x96   : > { %546 = vadd.xlane.f32.xlu2 %v545_v42 }
  0x97   : > { %542 = vadd.xlane.f32.xlu1 %v541_v52  ;;  %v557_v52 = vadd.f32 %v556_v33, %v450_v58  ;;  %v3796_v33 = vld [vmem:[#allocation52_spill] sm:$0xff] }
  0x98   : > { %538 = vadd.xlane.f32.xlu0 %v537_v22  ;;  %v553_v22 = vadd.f32 %v552_v32, %v448_v9  ;;  %v454_v58 = vmul.f32 %v3796_v33, %v3796_v33  ;;  %v3797_v9 = vld [vmem:[#allocation53_spill] sm:$0xff]  ;;  %v564_v32 = vsel %vm283_vm0, %v455_v54, 0.0  ;;  %v3799_v33 = vld [vmem:[#allocation55_spill] sm:$0xff]  ;;  %v459_v54 = vmul.f32 %v2222_v3, %v2222_v3 }
  0x99   : > { %v2374_v16 = vpop.xlane.xlu2 %318  ;;  %v452_v14 = vmul.f32 %v3797_v9, %v3797_v9  ;;  %v461_v44 = vmul.f32 %v3799_v33, %v3799_v33  ;;  %v580_v9 = vsel %vm283_vm0, %v463_v18, 0.0 }
  0x9a   : > { %v2376_v28 = vpop.xlane.xlu1 %314  ;;  %v581_v33 = vadd.f32 %v580_v9, %v462_v21  ;;  %v2459_v20 = vmul.f32 0.0051020407, %v2374_v16 }
  0x9b   : > { %v2378_v42 = vpop.xlane.xlu0 %310  ;;  %v561_v11 = vadd.f32 %v560_v59, %v452_v14  ;;  %v576_v14 = vsel %vm283_vm0, %v461_v44, 0.0 }
  0x9c   : > { %3802 = vst [vmem:[#allocation61_spill] sm:$0xff] %v2459_v20  ;;  %v2467_v23 = vmul.f32 0.0051020407, %v2378_v42  ;;  %v649_v42 = vmul.f32 %v2453_v50, %v2453_v50  ;;  %v2487_v41 = vmul.f32 %v2459_v20, %v2459_v20 }
  0x9e   : > { %558 = vadd.xlane.f32.xlu2 %v557_v52  ;;  %3804 = vst [vmem:[#allocation63_spill] sm:$0xff] %v2467_v23 }
  0x9f   : > { %554 = vadd.xlane.f32.xlu1 %v553_v22  ;;  %v569_v22 = vadd.f32 %v568_v30, %v456_v62  ;;  %v460_v30 = vmul.f32 %v2230_v12, %v2230_v12  ;;  %v3800_v62 = vld [vmem:[#allocation59_spill] sm:$0xff] }
  0xa0   : > { %550 = vadd.xlane.f32.xlu0 %v549_v46  ;;  %v565_v46 = vadd.f32 %v564_v32, %v454_v58  ;;  %v458_v58 = vmul.f32 %v3800_v62, %v3800_v62  ;;  %v572_v32 = vsel %vm283_vm0, %v459_v54, 0.0 }
  0xa1   : > { %v2395_v45 = vpop.xlane.xlu2 %330  ;;  %v577_v56 = vadd.f32 %v576_v14, %v460_v30  ;;  %v2444_v14 = vmul.f32 0.0051020407, %v2336_v35 }
  0xa2   : > { %v2397_v52 = vpop.xlane.xlu1 %326  ;;  %v573_v8 = vadd.f32 %v572_v32, %v458_v58  ;;  %v2441_v58 = vmul.f32 0.0051020407, %v2334_v6  ;;  %v2447_v32 = vmul.f32 0.0051020407, %v2357_v2  ;;  %v2462_v6 = vmul.f32 0.0051020407, %v2376_v28 }
  0xa3   : > { %v2399_v57 = vpop.xlane.xlu0 %322  ;;  %v644_v34 = vmul.f32 %v2444_v14, %v2444_v14  ;;  %v1933_v28 = vmov 0  }
  0xa4   : > { %3803 = vst [vmem:[#allocation62_spill] sm:$0xff] %v2462_v6  ;;  %v646_v2 = vmul.f32 %v2441_v58, %v2441_v58  ;;  %v645_v16 = vmul.f32 %v2447_v32, %v2447_v32  ;;  %1862 = vset.pattern.permute.xlu2 %v1933_v28  ;;  %1861 = vset.pattern.permute.xlu1 %v1933_v28 }
  0xa5   : > { %1860 = vset.pattern.permute.xlu0 %v1933_v28  ;;  %v2491_v26 = vmul.f32 %v2462_v6, %v2462_v6 }
  0xa6   : > { %570 = vadd.xlane.f32.xlu2 %v569_v22 }
  0xa7   : > { %566 = vadd.xlane.f32.xlu1 %v565_v46 }
  0xa8   : > { %562 = vadd.xlane.f32.xlu0 %v561_v11 }
  0xa9   : > { %v343_v59 = vpop.xlane.xlu2 %342 }
  0xaa   : > { %v339_v3 = vpop.xlane.xlu1 %338 }
  0xab   : > { %v335_v22 = vpop.xlane.xlu0 %334 }
  0xac   : > { %v2508_v28 = vmul.f32 0.0051020407, %v335_v22 }
  0xae   : > { %582 = vadd.xlane.f32.xlu2 %v581_v33  ;;  %3810 = vst [vmem:[#allocation69_spill] sm:$0xff] %v2508_v28 }
  0xaf   : > { %578 = vadd.xlane.f32.xlu1 %v577_v56 }
  0xb0   : > { %574 = vadd.xlane.f32.xlu0 %v573_v8 }
  0xb1   : > { %v355_v11 = vpop.xlane.xlu2 %354 }
  0xb2   : > { %v351_v18 = vpop.xlane.xlu1 %350 }
  0xb3   : > { %v347_v46 = vpop.xlane.xlu0 %346  ;;  %v2522_v48 = vmul.f32 0.0051020407, %v351_v18 }
  0xb4   : > { %v2524_v51 = vmul.f32 0.0051020407, %v347_v46 }
  0xb5   : > { %3812 = vst [vmem:[#allocation71_spill] sm:$0xff] %v2522_v48  ;;  %v2563_v29 = vmul.f32 %v2522_v48, %v2522_v48 }
  0xb6   : > { %3813 = vst [vmem:[#allocation72_spill] sm:$0xff] %v2524_v51  ;;  %v2567_v13 = vmul.f32 %v2524_v51, %v2524_v51 }
  0xb9   : > { %v2416_v12 = vpop.xlane.xlu2 %366 }
  0xba   : > { %v2418_v47 = vpop.xlane.xlu1 %362  ;;  %v2528_v25 = vmul.f32 0.0051020407, %v2416_v12 }
  0xbb   : > { %v2420_v62 = vpop.xlane.xlu0 %358 }
  0xbc   : > { %3814 = vst [vmem:[#allocation73_spill] sm:$0xff] %v2528_v25 }
  0xc1   : > { %v2422_v44 = vpop.xlane.xlu2 %378 }
  0xc2   : > { %v2424_v54 = vpop.xlane.xlu1 %374 }
  0xc3   : > { %v2426_v61 = vpop.xlane.xlu0 %370  ;;  %v2586_v1 = vmul.f32 0.0051020407, %v2424_v54 }
  0xc4   : > { %v2589_v0 = vmul.f32 0.0051020407, %v2426_v61 }
  0xc5   : > { %3818 = vst [vmem:[#allocation77_spill] sm:$0xff] %v2586_v1 }
  0xc6   : > { %3819 = vst [vmem:[#allocation78_spill] sm:$0xff] %v2589_v0 }
  0xc9   : > { %v2428_v9 = vpop.xlane.xlu2 %390 }
  0xca   : > { %v2430_v33 = vpop.xlane.xlu1 %386 }
  0xcb   : > { %v2432_v8 = vpop.xlane.xlu0 %382 }
  0xcc   : > { %v2628_v51 = vmul.f32 0.0051020407, %v2432_v8 }
  0xce   : > { %3822 = vst [vmem:[#allocation81_spill] sm:$0xff] %v2628_v51 }
  0xd1   : > { %v2434_v56 = vpop.xlane.xlu2 %402 }
  0xd2   : > { %v2436_v21 = vpop.xlane.xlu1 %398 }
  0xd3   : > { %v2438_v30 = vpop.xlane.xlu0 %394 }
  0xd9   : > { %v475_v35 = vpop.xlane.xlu2 %474 }
  0xda   : > { %v616_v40 = vmul.f32 0.0051020407, %v475_v35  ;;  %v471_v49 = vpop.xlane.xlu1 %470  ;;  %v2478_v35 = vmul.f32 0.0051020407, %v2395_v45  ;;  %v2495_v45 = vmul.f32 %v2467_v23, %v2467_v23 }
  0xdb   : > { %v467_v4 = vpop.xlane.xlu0 %466  ;;  %v615_v53 = vmul.f32 0.0051020407, %v471_v49  ;;  %v2483_v49 = vmul.f32 0.0051020407, %v2397_v52  ;;  %v2500_v52 = vmul.f32 0.0051020407, %v343_v59 }
  0xdc   : > { %v614_v38 = vmul.f32 0.0051020407, %v467_v4  ;;  %3805 = vst [vmem:[#allocation64_spill] sm:$0xff] %v2478_v35  ;;  %v676_v60 = vsub.f32 %v616_v40, %v646_v2  ;;  %v2498_v40 = vmul.f32 0.0051020407, %v2399_v57 }
  0xdd   : > { %3806 = vst [vmem:[#allocation65_spill] sm:$0xff] %v2483_v49  ;;  %v675_v4 = vsub.f32 %v615_v53, %v645_v16  ;;  %v2506_v16 = vmul.f32 0.0051020407, %v339_v3  ;;  %v2516_v57 = vmul.f32 0.0051020407, %v355_v11  ;;  %v2544_v12 = vmul.f32 %v2500_v52, %v2500_v52 }
  0xde   : > { %v674_v37 = vsub.f32 %v614_v38, %v644_v34  ;;  %v706_v2 = vmax.f32 %v676_v60, 0.0  ;;  %3807 = vst [vmem:[#allocation66_spill] sm:$0xff] %v2498_v40  ;;  %v2504_v34 = vmul.f32 %v2478_v35, %v2478_v35  ;;  %v2514_v60 = vmul.f32 %v2483_v49, %v2483_v49 }
  0xdf   : > { %3808 = vst [vmem:[#allocation67_spill] sm:$0xff] %v2500_v52  ;;  %v705_v53 = vmax.f32 %v675_v4, 0.0  ;;  %v2531_v11 = vmul.f32 0.0051020407, %v2418_v47  ;;  %v2548_v47 = vmul.f32 %v2506_v16, %v2506_v16 }
  0xe0   : > { %v704_v38 = vmax.f32 %v674_v37, 0.0  ;;  %3809 = vst [vmem:[#allocation68_spill] sm:$0xff] %v2506_v16  ;;  %v2510_v31 = vadd.f32 1e-05, %v706_v2 }
  0xe1   : > { %3811 = vst [vmem:[#allocation70_spill] sm:$0xff] %v2516_v57  ;;  %v2518_v59 = vadd.f32 1e-05, %v705_v53  ;;  %v487_v37 = vpop.xlane.xlu2 %486 }
  0xe2   : > { %v2520_v4 = vadd.f32 1e-05, %v704_v38  ;;  %1863 = vrsqrt.f32 %v2510_v31  ;;  %v619_v3 = vmul.f32 0.0051020407, %v487_v37  ;;  %v483_v22 = vpop.xlane.xlu1 %482  ;;  %3815 = vst [vmem:[#allocation74_spill] sm:$0xff] %v2531_v11  ;;  %v2540_v37 = vmul.f32 %v2498_v40, %v2498_v40 }
  0xe3   : > { %v479_v2 = vpop.xlane.xlu0 %478  ;;  %1865 = vrsqrt.f32 %v2518_v59  ;;  %v618_v53 = vmul.f32 0.0051020407, %v483_v22  ;;  %v2535_v38 = vmul.f32 0.0051020407, %v2420_v62  ;;  %v2552_v62 = vmul.f32 %v2508_v28, %v2508_v28 }
  0xe4   : > { %1867 = vrsqrt.f32 %v2520_v4  ;;  %v679_v18 = vsub.f32 %v619_v3, %v649_v42  ;;  %v617_v46 = vmul.f32 0.0051020407, %v479_v2  ;;  %v2556_v42 = vmul.f32 %v2516_v57, %v2516_v57 }
  0xe5   : > { %3816 = vst [vmem:[#allocation75_spill] sm:$0xff] %v2535_v38  ;;  %v678_v22 = vsub.f32 %v618_v53, %v648_v43  ;;  %v2559_v3 = vmul.f32 0.0051020407, %v2422_v44  ;;  %v2571_v43 = vmul.f32 %v2528_v25, %v2528_v25  ;;  %v2577_v44 = vmul.f32 %v2531_v11, %v2531_v11 }
  0xe6   : > { %v677_v2 = vsub.f32 %v617_v46, %v647_v63  ;;  %v2581_v63 = vmul.f32 %v2535_v38, %v2535_v38  ;;  %v709_v46 = vmax.f32 %v679_v18, 0.0  ;;  %v2621_v38 = vmul.f32 %v2586_v1, %v2586_v1 }
  0xe7   : > { %3817 = vst [vmem:[#allocation76_spill] sm:$0xff] %v2559_v3  ;;  %v708_v53 = vmax.f32 %v678_v22, 0.0  ;;  %v2599_v18 = vmul.f32 %v2559_v3, %v2559_v3  ;;  %v2625_v11 = vmul.f32 %v2589_v0, %v2589_v0  ;;  %v2643_v0 = vmul.f32 0.0051020407, %v2434_v56 }
  0xe8   : > { %v2573_v17 = vpop.eup %1863  ;;  %v707_v36 = vmax.f32 %v677_v2, 0.0  ;;  %v2602_v2 = vmul.f32 0.0051020407, %v2428_v9  ;;  %v2616_v3 = vadd.f32 1e-05, %v709_v46  ;;  %vm790_vm2 = vweird.f32 %v2510_v31 }
  0xe9   : > { %v2583_v39 = vpop.eup %1865  ;;  %v785_v22 = vmul.f32 %v2573_v17, %v2510_v31  ;;  %v2593_v5 = vadd.f32 1e-05, %v708_v53  ;;  %v499_v24 = vpop.xlane.xlu2 %498  ;;  %v2609_v53 = vmul.f32 0.0051020407, %v2430_v33  ;;  %3823 = vst [vmem:[#allocation82_spill] sm:$0xff] %v2643_v0  ;;  %vm791_vm1 = vweird.f32 %v2573_v17 }
  0xea   : > { %v2595_v27 = vpop.eup %1867  ;;  %3820 = vst [vmem:[#allocation79_spill] sm:$0xff] %v2602_v2  ;;  %v775_v54 = vmul.f32 %v2583_v39, %v2518_v59  ;;  %v2606_v61 = vadd.f32 1e-05, %v707_v36  ;;  %v495_v19 = vpop.xlane.xlu1 %494  ;;  %v622_v36 = vmul.f32 0.0051020407, %v499_v24  ;;  %v2634_v24 = vmul.f32 %v2602_v2, %v2602_v2  ;;  %vm792_vm6 = vmor %vm790_vm2, %vm791_vm1 }
  0xeb   : > { %v491_v10 = vpop.xlane.xlu0 %490  ;;  %3821 = vst [vmem:[#allocation80_spill] sm:$0xff] %v2609_v53  ;;  %v786_v15 = vmul.f32 %v2573_v17, %v785_v22  ;;  %v765_v25 = vmul.f32 %v2595_v27, %v2520_v4  ;;  %1869 = vrsqrt.f32 %v2593_v5  ;;  %v621_v57 = vmul.f32 0.0051020407, %v495_v19 }
  0xec   : > { %v776_v9 = vmul.f32 %v2583_v39, %v775_v54  ;;  %1871 = vrsqrt.f32 %v2606_v61  ;;  %v620_v22 = vmul.f32 0.0051020407, %v491_v10  ;;  %v682_v54 = vsub.f32 %v622_v36, %v2487_v41 }
  0xed   : > { %v787_v33 = vmul.f32 0.5, %v786_v15  ;;  %v766_v46 = vmul.f32 %v2595_v27, %v765_v25  ;;  %v2638_v15 = vmul.f32 %v2609_v53, %v2609_v53  ;;  %v681_v10 = vsub.f32 %v621_v57, %v2491_v26 }
  0xee   : > { %v680_v19 = vsub.f32 %v620_v22, %v2495_v45  ;;  %v777_v1 = vmul.f32 0.5, %v776_v9  ;;  %v712_v25 = vmax.f32 %v682_v54, 0.0  ;;  %v2649_v36 = vmul.f32 0.0051020407, %v2436_v21 }
  0xef   : > { %v788_v8 = vsub.f32 1.5, %v787_v33  ;;  %1873 = vrsqrt.f32 %v2616_v3  ;;  %v711_v2 = vmax.f32 %v681_v10, 0.0  ;;  %v2655_v56 = vmul.f32 0.0051020407, %v2438_v30 }
  0xf0   : > { %3824 = vst [vmem:[#allocation83_spill] sm:$0xff] %v2649_v36  ;;  %v710_v53 = vmax.f32 %v680_v19, 0.0  ;;  %v767_v45 = vmul.f32 0.5, %v766_v46  ;;  %v2661_v52 = vadd.f32 1e-05, %v712_v25  ;;  %v778_v30 = vsub.f32 1.5, %v777_v1 }
  0xf1   : > { %v2646_v41 = vpop.eup %1869  ;;  %v511_v26 = vpop.xlane.xlu2 %510  ;;  %3825 = vst [vmem:[#allocation84_spill] sm:$0xff] %v2655_v56  ;;  %v2663_v10 = vadd.f32 1e-05, %v711_v2  ;;  %vm780_vm3 = vweird.f32 %v2518_v59  ;;  %vm770_vm4 = vweird.f32 %v2520_v4  ;;  %v1066_v1 = vld [vmem:[%s2670_s22 + $0x10] sm:$0xff]  ;;  %vm781_vm5 = vweird.f32 %v2583_v39 }
  0xf2   : > { %v2652_v57 = vpop.eup %1871  ;;  %v805_v9 = vmul.f32 %v2646_v41, %v2593_v5  ;;  %v625_v33 = vmul.f32 0.0051020407, %v511_v26  ;;  %v507_v22 = vpop.xlane.xlu1 %506  ;;  %v2673_v46 = vadd.f32 1e-05, %v710_v53  ;;  %v789_v26 = vmul.f32 %v2573_v17, %v788_v8  ;;  %vm782_vm8 = vmor %vm780_vm3, %vm781_vm5 }
  0xf3   : > { %v503_v54 = vpop.xlane.xlu0 %502  ;;  %v795_v21 = vmul.f32 %v2652_v57, %v2606_v61  ;;  %1875 = vrsqrt.f32 %v2663_v10  ;;  %v768_v25 = vsub.f32 1.5, %v767_v45  ;;  %v624_v31 = vmul.f32 0.0051020407, %v507_v22 }
  0xf4   : > { %v685_v19 = vsub.f32 %v625_v33, %v2504_v34  ;;  %v806_v2 = vmul.f32 %v2646_v41, %v805_v9  ;;  %1877 = vrsqrt.f32 %v2661_v52  ;;  %v623_v8 = vmul.f32 0.0051020407, %v503_v54  ;;  %v1065_v33 = vld [vmem:[%s2670_s22 + $0x8] sm:$0xff] }
  0xf5   : > { %v2684_v53 = vpop.eup %1873  ;;  %v796_v34 = vmul.f32 %v2652_v57, %v795_v21  ;;  %1879 = vrsqrt.f32 %v2673_v46  ;;  %v793_v45 = vsel %vm792_vm6, %v2573_v17, %v789_v26  ;;  %v779_v9 = vmul.f32 %v2583_v39, %v778_v30 }
  0xf6   : > { %v715_v48 = vmax.f32 %v685_v19, 0.0  ;;  %vm771_vm7 = vweird.f32 %v2595_v27  ;;  %v807_v19 = vmul.f32 0.5, %v806_v2  ;;  %v684_v28 = vsub.f32 %v624_v31, %v2514_v60 }
  0xf7   : > { %v683_v21 = vsub.f32 %v623_v8, %v2540_v37  ;;  %v2697_v22 = vmul.f32 %v1066_v1, %v793_v45  ;;  %v815_v17 = vmul.f32 %v2684_v53, %v2616_v3  ;;  %v783_v26 = vsel %vm782_vm8, %v2583_v39, %v779_v9  ;;  %vm772_vm9 = vmor %vm770_vm4, %vm771_vm7 }
  0xf8   : > { %v2705_v30 = vadd.f32 1e-05, %v715_v48  ;;  %v769_v60 = vmul.f32 %v2595_v27, %v768_v25  ;;  %v797_v1 = vmul.f32 0.5, %v796_v34  ;;  %v714_v31 = vmax.f32 %v684_v28, 0.0  ;;  %v1064_v48 = vld [vmem:[%s2670_s22] sm:$0xff] }
  0xf9   : > { %v523_v54 = vpop.xlane.xlu2 %522  ;;  %v2709_v37 = vpop.eup %1875  ;;  %v713_v8 = vmax.f32 %v683_v21, 0.0  ;;  %1226 = vperm.xlu2 %1862, %v2697_v22   ;;  %v2712_v59 = vmul.f32 %v1065_v33, %v783_v26  ;;  %v2726_v33 = vmul.f32 %v2628_v51, %v2628_v51  ;;  %v808_v21 = vsub.f32 1.5, %v807_v19 }
  0xfa   : > { %v519_v2 = vpop.xlane.xlu1 %518  ;;  %v835_v39 = vmul.f32 %v2709_v37, %v2663_v10  ;;  %v773_v25 = vsel %vm772_vm9, %v2595_v27, %v769_v60  ;;  %v628_v9 = vmul.f32 0.0051020407, %v523_v54  ;;  %v2722_v28 = vpop.eup %1877  ;;  %v2728_v26 = vadd.f32 1e-05, %v714_v31 }
  0xfb   : > { %v515_v45 = vpop.xlane.xlu0 %514  ;;  %v627_v34 = vmul.f32 0.0051020407, %v519_v2  ;;  %v2730_v4 = vadd.f32 1e-05, %v713_v8  ;;  %1221 = vperm.xlu1 %1861, %v2712_v59   ;;  %v2733_v35 = vpop.eup %1879  ;;  %1881 = vrsqrt.f32 %v2705_v30  ;;  %v2736_v27 = vmul.f32 %v1064_v48, %v773_v25 }
  0xfc   : > { %v688_v54 = vsub.f32 %v628_v9, %v2544_v12  ;;  %v2742_v2 = vmul.f32 %v2643_v0, %v2643_v0  ;;  %v2746_v19 = vmul.f32 %v2649_v36, %v2649_v36  ;;  %v836_v31 = vmul.f32 %v2709_v37, %v835_v39 }
  0xfd   : > { %v687_v60 = vsub.f32 %v627_v34, %v2548_v47  ;;  %1883 = vrsqrt.f32 %v2728_v26  ;;  %v2752_v8 = vmul.f32 %v2655_v56, %v2655_v56  ;;  %v816_v12 = vmul.f32 %v2684_v53, %v815_v17  ;;  %1216 = vperm.xlu0 %1860, %v2736_v27   ;;  %v1068_v56 = vld [vmem:[%s2670_s22 + $0x20] sm:$0xff] }
  0xfe   : > { %v798_v47 = vsub.f32 1.5, %v797_v1  ;;  %v718_v48 = vmax.f32 %v688_v54, 0.0  ;;  %v845_v25 = vmul.f32 %v2722_v28, %v2661_v52  ;;  %v825_v9 = vmul.f32 %v2733_v35, %v2673_v46 }
  0xff   : > { %1885 = vrsqrt.f32 %v2730_v4  ;;  %v717_v39 = vmax.f32 %v687_v60, 0.0  ;;  %vm810_vm10 = vweird.f32 %v2593_v5  ;;  %v626_v0 = vmul.f32 0.0051020407, %v515_v45 }
 0x100   : > { %v2762_v34 = vadd.f32 1e-05, %v718_v48  ;;  %v809_v17 = vmul.f32 %v2646_v41, %v808_v21  ;;  %vm800_vm11 = vweird.f32 %v2606_v61  ;;  %v837_v1 = vmul.f32 0.5, %v836_v31 }
 0x101   : > { %v2766_v54 = vadd.f32 1e-05, %v717_v39  ;;  %vm811_vm12 = vweird.f32 %v2646_v41  ;;  %v2770_v36 = vpop.eup %1881  ;;  %v2772_v51 = vmul.f32 0.5, %v816_v12  ;;  %v686_v5 = vsub.f32 %v626_v0, %v2552_v62  ;;  %v535_v21 = vpop.xlane.xlu2 %534 }
 0x102   : > { %1887 = vrsqrt.f32 %v2762_v34  ;;  %vm812_vm13 = vmor %vm810_vm10, %vm811_vm12  ;;  %v799_v45 = vmul.f32 %v2652_v57, %v798_v47  ;;  %v531_v60 = vpop.xlane.xlu1 %530  ;;  %v846_v48 = vmul.f32 %v2722_v28, %v845_v25  ;;  %v826_v39 = vmul.f32 %v2733_v35, %v825_v9  ;;  %v1067_v47 = vld [vmem:[%s2670_s22 + $0x18] sm:$0xff] }
 0x103   : > { %v2777_v31 = vpop.eup %1883  ;;  %1889 = vrsqrt.f32 %v2766_v54  ;;  %v813_v12 = vsel %vm812_vm13, %v2646_v41, %v809_v17  ;;  %v527_v16 = vpop.xlane.xlu0 %526  ;;  %v716_v0 = vmax.f32 %v686_v5, 0.0  ;;  %vm801_vm14 = vweird.f32 %v2652_v57 }
 0x104   : > { %v865_v40 = vmul.f32 %v2777_v31, %v2728_v26  ;;  %v2785_v62 = vmul.f32 %v1068_v56, %v813_v12  ;;  %v838_v49 = vsub.f32 1.5, %v837_v1  ;;  %v875_v25 = vmul.f32 %v2770_v36, %v2705_v30  ;;  %vm802_vm15 = vmor %vm800_vm11, %vm801_vm14 }
 0x105   : > { %v2789_v20 = vpop.eup %1885  ;;  %v631_v41 = vmul.f32 0.0051020407, %v535_v21  ;;  %v630_v9 = vmul.f32 0.0051020407, %v531_v60  ;;  %v2796_v23 = vadd.f32 1e-05, %v716_v0  ;;  %v803_v56 = vsel %vm802_vm15, %v2652_v57, %v799_v45 }
 0x106   : > { %v866_v17 = vmul.f32 %v2777_v31, %v865_v40  ;;  %1236 = vperm.xlu1 %1861, %v2785_v62   ;;  %v629_v5 = vmul.f32 0.0051020407, %v527_v16  ;;  %vm840_vm1 = vweird.f32 %v2663_v10  ;;  %v2801_v1 = vmul.f32 %v1067_v47, %v803_v56 }
 0x107   : > { %v691_v12 = vsub.f32 %v631_v41, %v2556_v42  ;;  %v690_v61 = vsub.f32 %v630_v9, %v2563_v29  ;;  %vm820_vm2 = vweird.f32 %v2616_v3  ;;  %v827_v40 = vmul.f32 0.5, %v826_v39 }
 0x108   : > { %3826 = vst [vmem:[#allocation85_spill] sm:$0xff] %v2801_v1  ;;  %v2805_v50 = vpop.eup %1887  ;;  %v855_v21 = vmul.f32 %v2789_v20, %v2730_v4  ;;  %1891 = vrsqrt.f32 %v2796_v23  ;;  %v689_v16 = vsub.f32 %v629_v5, %v2567_v13  ;;  %v2814_v45 = vmul.f32 0.5, %v846_v48  ;;  %1231 = vperm.xlu2 %1862, %v2801_v1  }
 0x109   : > { %v2812_v57 = vpop.eup %1889  ;;  %vm830_vm3 = vweird.f32 %v2673_v46  ;;  %v876_v29 = vmul.f32 %v2770_v36, %v875_v25  ;;  %v721_v42 = vmax.f32 %v691_v12, 0.0  ;;  %v720_v60 = vmax.f32 %v690_v61, 0.0  ;;  %v547_v61 = vpop.xlane.xlu2 %546 }
 0x10a   : > { %v818_v39 = vsub.f32 1.5, %v2772_v51  ;;  %v867_v0 = vmul.f32 0.5, %v866_v17  ;;  %v719_v47 = vmax.f32 %v689_v16, 0.0  ;;  %v839_v41 = vmul.f32 %v2709_v37, %v838_v49  ;;  %v1071_v51 = vld [vmem:[%s2670_s22 + $0x38] sm:$0xff] }
 0x10b   : > { %vm870_vm4 = vweird.f32 %v2728_v26  ;;  %v895_v13 = vmul.f32 %v2812_v57, %v2766_v54  ;;  %v2824_v48 = vadd.f32 1e-05, %v721_v42  ;;  %v2826_v9 = vadd.f32 1e-05, %v720_v60  ;;  %v539_v42 = vpop.xlane.xlu0 %538 }
 0x10c   : > { %v828_v25 = vsub.f32 1.5, %v827_v40  ;;  %v856_v56 = vmul.f32 %v2789_v20, %v855_v21  ;;  %v2829_v5 = vadd.f32 1e-05, %v719_v47  ;;  %vm841_vm5 = vweird.f32 %v2709_v37 }
 0x10d   : > { %v848_v17 = vsub.f32 1.5, %v2814_v45  ;;  %v2834_v49 = vmul.f32 0.5, %v876_v29  ;;  %v905_v12 = vmul.f32 %v2805_v50, %v2762_v34  ;;  %1893 = vrsqrt.f32 %v2824_v48  ;;  %vm842_vm6 = vmor %vm840_vm1, %vm841_vm5  ;;  %v543_v29 = vpop.xlane.xlu1 %542 }
 0x10e   : > { %v2841_v40 = vpop.eup %1891  ;;  %v868_v21 = vsub.f32 1.5, %v867_v0  ;;  %1895 = vrsqrt.f32 %v2826_v9  ;;  %v843_v16 = vsel %vm842_vm6, %v2709_v37, %v839_v41  ;;  %v819_v45 = vmul.f32 %v2684_v53, %v818_v39  ;;  %v1069_v37 = vld [vmem:[%s2670_s22 + $0x28] sm:$0xff]  ;;  %v1070_v41 = vld [vmem:[%s2670_s22 + $0x30] sm:$0xff] }
 0x10f   : > { %vm850_vm7 = vweird.f32 %v2661_v52  ;;  %v896_v60 = vmul.f32 %v2812_v57, %v895_v13  ;;  %v885_v10 = vmul.f32 %v2841_v40, %v2796_v23  ;;  %1897 = vrsqrt.f32 %v2829_v5 }
 0x110   : > { %v2851_v47 = vmul.f32 %v1071_v51, %v843_v16  ;;  %v2853_v0 = vmul.f32 0.5, %v856_v56  ;;  %vm821_vm8 = vweird.f32 %v2684_v53  ;;  %v829_v39 = vmul.f32 %v2733_v35, %v828_v25 }
 0x111   : > { %vm831_vm9 = vweird.f32 %v2733_v35  ;;  %v886_v6 = vmul.f32 %v2841_v40, %v885_v10  ;;  %vm822_vm10 = vmor %vm820_vm2, %vm821_vm8  ;;  %v634_v13 = vmul.f32 0.0051020407, %v547_v61  ;;  %v633_v51 = vmul.f32 0.0051020407, %v543_v29 }
 0x112   : > { %3827 = vst [vmem:[#allocation86_spill] sm:$0xff] %v2851_v47  ;;  %1251 = vperm.xlu0 %1860, %v2851_v47   ;;  %v632_v16 = vmul.f32 0.0051020407, %v539_v42  ;;  %v906_v56 = vmul.f32 %v2805_v50, %v905_v12  ;;  %v823_v1 = vsel %vm822_vm10, %v2684_v53, %v819_v45  ;;  %vm832_vm11 = vmor %vm830_vm3, %vm831_vm9  ;;  %v869_v25 = vmul.f32 %v2777_v31, %v868_v21 }
 0x113   : > { %vm871_vm12 = vweird.f32 %v2777_v31  ;;  %v2870_v10 = vpop.eup %1893  ;;  %v897_v47 = vmul.f32 0.5, %v896_v60  ;;  %v2872_v3 = vmul.f32 %v1069_v37, %v823_v1  ;;  %v833_v61 = vsel %vm832_vm11, %v2733_v35, %v829_v39  ;;  %v1074_v1 = vld [vmem:[%s2670_s22 + $0x50] sm:$0xff] }
 0x114   : > { %v694_v29 = vsub.f32 %v634_v13, %v2571_v43  ;;  %v2876_v12 = vpop.eup %1895  ;;  %vm860_vm13 = vweird.f32 %v2730_v4  ;;  %v2879_v53 = vmul.f32 %v1070_v41, %v833_v61  ;;  %v693_v46 = vsub.f32 %v633_v51, %v2577_v44  ;;  %vm2885_vm14 = vmor %vm870_vm4, %vm871_vm12  ;;  %v1075_v4 = vld [vmem:[%s2670_s22 + $0x58] sm:$0xff] }
 0x115   : > { %v692_v21 = vsub.f32 %v632_v16, %v2581_v63  ;;  %v849_v35 = vmul.f32 %v2722_v28, %v848_v17  ;;  %v2891_v43 = vpop.eup %1897  ;;  %v2893_v42 = vmul.f32 0.5, %v886_v6  ;;  %v925_v60 = vmul.f32 %v2876_v12, %v2826_v9  ;;  %1241 = vperm.xlu2 %1862, %v2872_v3  }
 0x116   : > { %v724_v44 = vmax.f32 %v694_v29, 0.0  ;;  %v873_v63 = vsel %vm2885_vm14, %v2777_v31, %v869_v25  ;;  %vm880_vm15 = vweird.f32 %v2705_v30  ;;  %v935_v26 = vmul.f32 %v2870_v10, %v2824_v48  ;;  %1246 = vperm.xlu1 %1861, %v2879_v53   ;;  %v1072_v29 = vld [vmem:[%s2670_s22 + $0x40] sm:$0xff] }
 0x117   : > { %v915_v6 = vmul.f32 %v2891_v43, %v2829_v5  ;;  %v723_v17 = vmax.f32 %v693_v46, 0.0  ;;  %v722_v37 = vmax.f32 %v692_v21, 0.0  ;;  %v926_v39 = vmul.f32 %v2876_v12, %v925_v60  ;;  %v559_v21 = vpop.xlane.xlu2 %558  ;;  %v551_v60 = vpop.xlane.xlu0 %550 }
 0x118   : > { %v2908_v41 = vadd.f32 1e-05, %v724_v44  ;;  %v2910_v13 = vmul.f32 %v1074_v1, %v873_v63  ;;  %vm851_vm1 = vweird.f32 %v2722_v28  ;;  %v858_v31 = vsub.f32 1.5, %v2853_v0 }
 0x119   : > { %v916_v51 = vmul.f32 %v2891_v43, %v915_v6  ;;  %v2915_v16 = vadd.f32 1e-05, %v723_v17  ;;  %v2917_v25 = vadd.f32 1e-05, %v722_v37  ;;  %vm2921_vm2 = vmor %vm850_vm7, %vm851_vm1  ;;  %v898_v46 = vsub.f32 1.5, %v897_v47  ;;  %v555_v47 = vpop.xlane.xlu1 %554  ;;  %v1077_v37 = vld [vmem:[%s2670_s22 + $0x68] sm:$0xff] }
 0x11a   : > { %vm900_vm3 = vweird.f32 %v2766_v54  ;;  %1899 = vrsqrt.f32 %v2908_v41  ;;  %1266 = vperm.xlu0 %1860, %v2910_v13   ;;  %v853_v0 = vsel %vm2921_vm2, %v2722_v28, %v849_v35  ;;  %v878_v52 = vsub.f32 1.5, %v2834_v49  ;;  %v1073_v35 = vld [vmem:[%s2670_s22 + $0x48] sm:$0xff] }
 0x11b   : > { %v2933_v45 = vmul.f32 0.5, %v906_v56  ;;  %v888_v1 = vsub.f32 1.5, %v2893_v42  ;;  %1901 = vrsqrt.f32 %v2915_v16  ;;  %v936_v44 = vmul.f32 %v2870_v10, %v935_v26 }
 0x11c   : > { %v2938_v63 = vmul.f32 0.5, %v926_v39  ;;  %1903 = vrsqrt.f32 %v2917_v25  ;;  %v2941_v28 = vmul.f32 %v1072_v29, %v853_v0  ;;  %vm890_vm4 = vweird.f32 %v2796_v23 }
 0x11d   : > { %v2944_v49 = vmul.f32 0.5, %v916_v51  ;;  %v859_v56 = vmul.f32 %v2789_v20, %v858_v31  ;;  %vm861_vm5 = vweird.f32 %v2789_v20  ;;  %v637_v42 = vmul.f32 0.0051020407, %v559_v21 }
 0x11e   : > { %1256 = vperm.xlu2 %1862, %v2941_v28   ;;  %vm862_vm6 = vmor %vm860_vm13, %vm861_vm5  ;;  %v636_v26 = vmul.f32 0.0051020407, %v555_v47  ;;  %v635_v6 = vmul.f32 0.0051020407, %v551_v60  ;;  %v899_v17 = vmul.f32 %v2812_v57, %v898_v46  ;;  %vm901_vm7 = vweird.f32 %v2812_v57 }
 0x11f   : > { %v863_v39 = vsel %vm862_vm6, %v2789_v20, %v859_v56  ;;  %v697_v31 = vsub.f32 %v637_v42, %v2599_v18  ;;  %vm902_vm8 = vmor %vm900_vm3, %vm901_vm7  ;;  %v879_v51 = vmul.f32 %v2770_v36, %v878_v52  ;;  %vm881_vm9 = vweird.f32 %v2770_v36 }
 0x120   : > { %v2962_v61 = vpop.eup %1899  ;;  %v2964_v29 = vmul.f32 %v1073_v35, %v863_v39  ;;  %v696_v46 = vsub.f32 %v636_v26, %v2621_v38  ;;  %v695_v0 = vsub.f32 %v635_v6, %v2625_v11  ;;  %v903_v20 = vsel %vm902_vm8, %v2812_v57, %v899_v17  ;;  %vm882_vm10 = vmor %vm880_vm15, %vm881_vm9 }
 0x121   : > { %v2971_v18 = vpop.eup %1901  ;;  %v965_v54 = vmul.f32 %v2962_v61, %v2908_v41  ;;  %v727_v21 = vmax.f32 %v697_v31, 0.0  ;;  %v2975_v52 = vmul.f32 %v1077_v37, %v903_v20  ;;  %v883_v47 = vsel %vm882_vm10, %v2770_v36, %v879_v51  ;;  %v1076_v31 = vld [vmem:[%s2670_s22 + $0x60] sm:$0xff]  ;;  %v571_v51 = vpop.xlane.xlu2 %570 }
 0x122   : > { %v2978_v60 = vpop.eup %1903  ;;  %vm910_vm11 = vweird.f32 %v2762_v34  ;;  %v955_v11 = vmul.f32 %v2971_v18, %v2915_v16  ;;  %1261 = vperm.xlu1 %1861, %v2964_v29   ;;  %v726_v38 = vmax.f32 %v696_v46, 0.0  ;;  %v725_v30 = vmax.f32 %v695_v0, 0.0  ;;  %v1079_v34 = vld [vmem:[%s2670_s22 + $0x78] sm:$0xff] }
 0x123   : > { %v2984_v57 = vmul.f32 %v1075_v4, %v883_v47  ;;  %v966_v56 = vmul.f32 %v2962_v61, %v965_v54  ;;  %v945_v35 = vmul.f32 %v2978_v60, %v2917_v25  ;;  %v2989_v36 = vadd.f32 1e-05, %v727_v21  ;;  %1281 = vperm.xlu0 %1860, %v2975_v52   ;;  %v567_v4 = vpop.xlane.xlu1 %566 }
 0x124   : > { %v889_v42 = vmul.f32 %v2841_v40, %v888_v1  ;;  %v956_v26 = vmul.f32 %v2971_v18, %v955_v11  ;;  %v2994_v6 = vadd.f32 1e-05, %v726_v38  ;;  %v2996_v17 = vadd.f32 1e-05, %v725_v30 }
 0x125   : > { %vm891_vm12 = vweird.f32 %v2841_v40  ;;  %v928_v37 = vsub.f32 1.5, %v2938_v63  ;;  %vm930_vm13 = vweird.f32 %v2826_v9  ;;  %v946_v39 = vmul.f32 %v2978_v60, %v945_v35  ;;  %v563_v63 = vpop.xlane.xlu0 %562 }
 0x126   : > { %1905 = vrsqrt.f32 %v2989_v36  ;;  %v908_v1 = vsub.f32 1.5, %v2933_v45  ;;  %v3005_v46 = vmul.f32 0.5, %v936_v44  ;;  %vm920_vm14 = vweird.f32 %v2829_v5  ;;  %1271 = vperm.xlu2 %1862, %v2984_v57   ;;  %vm892_vm15 = vmor %vm890_vm4, %vm891_vm12 }
 0x127   : > { %1907 = vrsqrt.f32 %v2994_v6  ;;  %v918_v0 = vsub.f32 1.5, %v2944_v49  ;;  %v3013_v20 = vmul.f32 0.5, %v966_v56  ;;  %v893_v45 = vsel %vm892_vm15, %v2841_v40, %v889_v42  ;;  %v1080_v49 = vld [vmem:[%s2670_s22 + $0x80] sm:$0xff] }
 0x128   : > { %1909 = vrsqrt.f32 %v2996_v17  ;;  %v3017_v44 = vmul.f32 0.5, %v956_v26  ;;  %v3019_v54 = vmul.f32 %v1076_v31, %v893_v45  ;;  %v640_v21 = vmul.f32 0.0051020407, %v571_v51 }
 0x129   : > { %v639_v47 = vmul.f32 0.0051020407, %v567_v4  ;;  %v3021_v11 = vmul.f32 0.5, %v946_v39  ;;  %v638_v38 = vmul.f32 0.0051020407, %v563_v63  ;;  %v929_v23 = vmul.f32 %v2876_v12, %v928_v37 }
 0x12a   : > { %vm931_vm1 = vweird.f32 %v2876_v12  ;;  %1276 = vperm.xlu1 %1861, %v3019_v54   ;;  %v700_v30 = vsub.f32 %v640_v21, %v2634_v24  ;;  %v909_v56 = vmul.f32 %v2805_v50, %v908_v1  ;;  %vm911_vm3 = vweird.f32 %v2805_v50 }
 0x12b   : > { %v699_v40 = vsub.f32 %v639_v47, %v2638_v15  ;;  %vm932_vm2 = vmor %vm930_vm13, %vm931_vm1  ;;  %v698_v42 = vsub.f32 %v638_v38, %v2726_v33  ;;  %v919_v15 = vmul.f32 %v2891_v43, %v918_v0  ;;  %vm921_vm5 = vweird.f32 %v2891_v43 }
 0x12c   : > { %v3033_v35 = vpop.eup %1905  ;;  %v933_v26 = vsel %vm932_vm2, %v2876_v12, %v929_v23  ;;  %vm3039_vm4 = vmor %vm910_vm11, %vm911_vm3  ;;  %v730_v39 = vmax.f32 %v700_v30, 0.0  ;;  %v1078_v12 = vld [vmem:[%s2670_s22 + $0x70] sm:$0xff]  ;;  %v958_v45 = vsub.f32 1.5, %v3017_v44  ;;  %v938_v44 = vsub.f32 1.5, %v3005_v46 }
 0x12d   : > { %v3045_v9 = vpop.eup %1907  ;;  %v995_v37 = vmul.f32 %v3033_v35, %v2989_v36  ;;  %v729_v31 = vmax.f32 %v699_v40, 0.0  ;;  %v3049_v33 = vmul.f32 %v1080_v49, %v933_v26  ;;  %vm922_vm6 = vmor %vm920_vm14, %vm921_vm5  ;;  %v728_v1 = vmax.f32 %v698_v42, 0.0  ;;  %v579_v40 = vpop.xlane.xlu1 %578 }
 0x12e   : > { %v3055_v51 = vpop.eup %1909  ;;  %v985_v4 = vmul.f32 %v3045_v9, %v2994_v6  ;;  %v913_v63 = vsel %vm3039_vm4, %v2805_v50, %v909_v56  ;;  %v923_v0 = vsel %vm922_vm6, %v2891_v43, %v919_v15  ;;  %v3066_v5 = vadd.f32 1e-05, %v730_v39  ;;  %v583_v43 = vpop.xlane.xlu2 %582 }
 0x12f   : > { %v975_v21 = vmul.f32 %v3055_v51, %v2996_v17  ;;  %v3068_v47 = vadd.f32 1e-05, %v729_v31  ;;  %1296 = vperm.xlu0 %1860, %v3049_v33   ;;  %v3072_v23 = vadd.f32 1e-05, %v728_v1  ;;  %v3074_v49 = vmul.f32 %v1078_v12, %v913_v63  ;;  %v575_v56 = vpop.xlane.xlu0 %574 }
 0x130   : > { %v986_v38 = vmul.f32 %v3045_v9, %v985_v4  ;;  %v3076_v50 = vmul.f32 %v1079_v34, %v923_v0  ;;  %vm940_vm7 = vweird.f32 %v2824_v48  ;;  %v996_v30 = vmul.f32 %v3033_v35, %v995_v37  ;;  %v1083_v34 = vld [vmem:[%s2670_s22 + $0x98] sm:$0xff] }
 0x131   : > { %1911 = vrsqrt.f32 %v3066_v5  ;;  %vm960_vm8 = vweird.f32 %v2915_v16  ;;  %v948_v42 = vsub.f32 1.5, %v3021_v11  ;;  %vm950_vm9 = vweird.f32 %v2917_v25  ;;  %1286 = vperm.xlu2 %1862, %v3074_v49  }
 0x132   : > { %1913 = vrsqrt.f32 %v3068_v47  ;;  %v968_v46 = vsub.f32 1.5, %v3013_v20  ;;  %v976_v26 = vmul.f32 %v3055_v51, %v975_v21  ;;  %1291 = vperm.xlu1 %1861, %v3076_v50   ;;  %v643_v24 = vmul.f32 0.0051020407, %v583_v43 }
 0x133   : > { %1915 = vrsqrt.f32 %v3072_v23  ;;  %v987_v15 = vmul.f32 0.5, %v986_v38  ;;  %v642_v37 = vmul.f32 0.0051020407, %v579_v40  ;;  %v641_v39 = vmul.f32 0.0051020407, %v575_v56 }
 0x134   : > { %v959_v11 = vmul.f32 %v2971_v18, %v958_v45  ;;  %v3092_v31 = vmul.f32 0.5, %v996_v30  ;;  %v703_v12 = vsub.f32 %v643_v24, %v2742_v2  ;;  %vm961_vm10 = vweird.f32 %v2971_v18  ;;  %v1081_v30 = vld [vmem:[%s2670_s22 + $0x88] sm:$0xff] }
 0x135   : > { %v939_v20 = vmul.f32 %v2870_v10, %v938_v44  ;;  %v702_v4 = vsub.f32 %v642_v37, %v2746_v19  ;;  %v701_v1 = vsub.f32 %v641_v39, %v2752_v8  ;;  %vm962_vm11 = vmor %vm960_vm8, %vm961_vm10  ;;  %vm941_vm12 = vweird.f32 %v2870_v10  ;;  %v1084_v44 = vld [vmem:[%s2670_s22 + $0xa0] sm:$0xff] }
 0x136   : > { %v949_v63 = vmul.f32 %v2978_v60, %v948_v42  ;;  %vm970_vm13 = vweird.f32 %v2908_v41  ;;  %v977_v2 = vmul.f32 0.5, %v976_v26  ;;  %v733_v45 = vmax.f32 %v703_v12, 0.0  ;;  %vm3115_vm15 = vmor %vm940_vm7, %vm941_vm12 }
 0x137   : > { %v3104_v0 = vpop.eup %1911  ;;  %v963_v21 = vsel %vm962_vm11, %v2971_v18, %v959_v11  ;;  %vm951_vm14 = vweird.f32 %v2978_v60  ;;  %v988_v8 = vsub.f32 1.5, %v987_v15  ;;  %v732_v16 = vmax.f32 %v702_v4, 0.0 }
 0x138   : > { %v3109_v19 = vpop.eup %1913  ;;  %v731_v38 = vmax.f32 %v701_v1, 0.0  ;;  %v3111_v43 = vmul.f32 %v1083_v34, %v963_v21  ;;  %v1025_v18 = vmul.f32 %v3104_v0, %v3066_v5  ;;  %v3126_v42 = vadd.f32 1e-05, %v733_v45  ;;  %vm3133_vm1 = vmor %vm950_vm9, %vm951_vm14  ;;  %v1086_v45 = vld [vmem:[%s2670_s22 + $0xb0] sm:$0xff] }
 0x139   : > { %v3120_v40 = vpop.eup %1915  ;;  %v1015_v56 = vmul.f32 %v3109_v19, %v3068_v47  ;;  %v943_v26 = vsel %vm3115_vm15, %v2870_v10, %v939_v20  ;;  %v3139_v15 = vadd.f32 1e-05, %v732_v16  ;;  %v953_v39 = vsel %vm3133_vm1, %v2978_v60, %v949_v63  ;;  %v1082_v10 = vld [vmem:[%s2670_s22 + $0x90] sm:$0xff] }
 0x13a   : > { %v1005_v24 = vmul.f32 %v3120_v40, %v3072_v23  ;;  %v3141_v37 = vadd.f32 1e-05, %v731_v38  ;;  %1311 = vperm.xlu0 %1860, %v3111_v43   ;;  %v978_v11 = vsub.f32 1.5, %v977_v2  ;;  %1917 = vrsqrt.f32 %v3126_v42 }
 0x13b   : > { %v1016_v25 = vmul.f32 %v3109_v19, %v1015_v56  ;;  %v3150_v12 = vmul.f32 %v1081_v30, %v943_v26  ;;  %vm990_vm2 = vweird.f32 %v2994_v6  ;;  %1919 = vrsqrt.f32 %v3139_v15  ;;  %v1085_v6 = vld [vmem:[%s2670_s22 + $0xa8] sm:$0xff] }
 0x13c   : > { %v1006_v34 = vmul.f32 %v3120_v40, %v1005_v24  ;;  %v989_v20 = vmul.f32 %v3045_v9, %v988_v8  ;;  %v998_v4 = vsub.f32 1.5, %v3092_v31  ;;  %1921 = vrsqrt.f32 %v3141_v37 }
 0x13d   : > { %v1017_v60 = vmul.f32 0.5, %v1016_v25  ;;  %1301 = vperm.xlu2 %1862, %v3150_v12   ;;  %v3159_v1 = vmul.f32 %v1082_v10, %v953_v39  ;;  %v1026_v63 = vmul.f32 %v3104_v0, %v1025_v18  ;;  %vm991_vm3 = vweird.f32 %v3045_v9 }
 0x13e   : > { %v1007_v2 = vmul.f32 0.5, %v1006_v34  ;;  %v969_v21 = vmul.f32 %v2962_v61, %v968_v46  ;;  %vm992_vm4 = vmor %vm990_vm2, %vm991_vm3  ;;  %vm971_vm5 = vweird.f32 %v2962_v61  ;;  %v979_v31 = vmul.f32 %v3055_v51, %v978_v11  ;;  %v1089_v34 = vld [vmem:[%s2670_s22 + $0xc8] sm:$0xff] }
 0x13f   : > { %v1018_v8 = vsub.f32 1.5, %v1017_v60  ;;  %1306 = vperm.xlu1 %1861, %v3159_v1   ;;  %vm981_vm6 = vweird.f32 %v3055_v51  ;;  %vm980_vm7 = vweird.f32 %v2996_v17  ;;  %v993_v38 = vsel %vm992_vm4, %v3045_v9, %v989_v20  ;;  %vm3175_vm8 = vmor %vm970_vm13, %vm971_vm5 }
 0x140   : > { %v1008_v16 = vsub.f32 1.5, %v1007_v2  ;;  %vm1021_vm9 = vweird.f32 %v3109_v19  ;;  %v3182_v30 = vpop.eup %1917  ;;  %vm1020_vm10 = vweird.f32 %v3068_v47  ;;  %v3185_v18 = vmul.f32 %v1086_v45, %v993_v38  ;;  %vm982_vm11 = vmor %vm980_vm7, %vm981_vm6 }
 0x141   : > { %v973_v17 = vsel %vm3175_vm8, %v2962_v61, %v969_v21  ;;  %v1019_v41 = vmul.f32 %v3109_v19, %v1018_v8  ;;  %v1920_v9 = vpop.eup %1919  ;;  %v1027_v56 = vmul.f32 0.5, %v1026_v63  ;;  %v983_v26 = vsel %vm982_vm11, %v3055_v51, %v979_v31  ;;  %vm1022_vm13 = vmor %vm1020_vm10, %vm1021_vm9  ;;  %v1087_v21 = vld [vmem:[%s2670_s22 + $0xb8] sm:$0xff]  ;;  %v1088_v31 = vld [vmem:[%s2670_s22 + $0xc0] sm:$0xff] }
 0x142   : > { %v999_v48 = vmul.f32 %v3033_v35, %v998_v4  ;;  %vm1001_vm12 = vweird.f32 %v3033_v35  ;;  %v1922_v24 = vpop.eup %1921  ;;  %v1055_v39 = vmul.f32 %v3182_v30, %v3126_v42  ;;  %v1045_v10 = vmul.f32 %v1920_v9, %v3139_v15  ;;  %1326 = vperm.xlu0 %1860, %v3185_v18  }
 0x143   : > { %v3198_v61 = vmul.f32 %v1084_v44, %v973_v17  ;;  %v3200_v11 = vmul.f32 %v1085_v6, %v983_v26  ;;  %v1035_v51 = vmul.f32 %v1922_v24, %v3141_v37  ;;  %v1023_v25 = vsel %vm1022_vm13, %v3109_v19, %v1019_v41 }
 0x144   : > { %v1009_v20 = vmul.f32 %v3120_v40, %v1008_v16  ;;  %vm1011_vm14 = vweird.f32 %v3120_v40  ;;  %vm1000_vm15 = vweird.f32 %v2989_v36  ;;  %v1046_v4 = vmul.f32 %v1920_v9, %v1045_v10 }
 0x145   : > { %1316 = vperm.xlu2 %1862, %v3198_v61   ;;  %vm1010_vm1 = vweird.f32 %v3072_v23  ;;  %v1036_v47 = vmul.f32 %v1922_v24, %v1035_v51  ;;  %vm3216_vm2 = vmor %vm1000_vm15, %vm1001_vm12  ;;  %v1028_v19 = vsub.f32 1.5, %v1027_v56  ;;  %v3221_v2 = vmul.f32 %v1089_v34, %v1023_v25  ;;  %v1091_v51 = vld [vmem:[%s2670_s22 + $0xd8] sm:$0xff]  ;;  %v1093_v34 = vld [vmem:[%s2670_s22 + $0xe8] sm:$0xff] }
 0x146   : > { %v1047_v63 = vmul.f32 0.5, %v1046_v4  ;;  %vm1012_vm3 = vmor %vm1010_vm1, %vm1011_vm14  ;;  %v1056_v36 = vmul.f32 %v3182_v30, %v1055_v39  ;;  %v1003_v23 = vsel %vm3216_vm2, %v3033_v35, %v999_v48  ;;  %vm1051_vm4 = vweird.f32 %v1920_v9  ;;  %v1092_v35 = vld [vmem:[%s2670_s22 + $0xe0] sm:$0xff]  ;;  %v1090_v39 = vld [vmem:[%s2670_s22 + $0xd0] sm:$0xff] }
 0x147   : > { %1321 = vperm.xlu1 %1861, %v3200_v11   ;;  %v1037_v45 = vmul.f32 0.5, %v1036_v47  ;;  %v1013_v8 = vsel %vm1012_vm3, %v3120_v40, %v1009_v20  ;;  %vm1050_vm5 = vweird.f32 %v3139_v15  ;;  %v3232_v46 = vmul.f32 %v1087_v21, %v1003_v23  ;;  %v1124_v47 = vld [vmem:[%s3258_s25] sm:$0xff] }
 0x148   : > { %v1048_v16 = vsub.f32 1.5, %v1047_v63  ;;  %v3234_v44 = vmul.f32 %v1088_v31, %v1013_v8  ;;  %vm1031_vm6 = vweird.f32 %v3104_v0  ;;  %v1057_v17 = vmul.f32 0.5, %v1056_v36  ;;  %vm1052_vm7 = vmor %vm1050_vm5, %vm1051_vm4  ;;  %v3842_v63 = vld [vmem:[#allocation85_spill] sm:$0xff]  ;;  %v3844_v21 = vld [vmem:[#allocation86_spill] sm:$0xff] }
 0x149   : > { %v1038_v38 = vsub.f32 1.5, %v1037_v45  ;;  %v1029_v40 = vmul.f32 %v3104_v0, %v1028_v19  ;;  %vm1041_vm8 = vweird.f32 %v1922_v24  ;;  %vm1030_vm9 = vweird.f32 %v3066_v5  ;;  %v1127_v45 = vld [vmem:[%s3258_s25 + $0x18] sm:$0xff] }
 0x14a   : > { %1341 = vperm.xlu0 %1860, %v3221_v2   ;;  %v1049_v6 = vmul.f32 %v1920_v9, %v1048_v16  ;;  %vm1040_vm10 = vweird.f32 %v3141_v37  ;;  %vm1032_vm11 = vmor %vm1030_vm9, %vm1031_vm6  ;;  %v1058_v26 = vsub.f32 1.5, %v1057_v17  ;;  %vm1061_vm13 = vweird.f32 %v3182_v30  ;;  %v1131_v31 = vld [vmem:[%s3258_s25 + $0x38] sm:$0xff]  ;;  %v3845_v16 = vld [vmem:[#allocation60_spill] sm:$0xff] }
 0x14b   : > { %v1039_v41 = vmul.f32 %v1922_v24, %v1038_v38  ;;  %vm1042_vm12 = vmor %vm1040_vm10, %vm1041_vm8  ;;  %v1033_v48 = vsel %vm1032_vm11, %v3104_v0, %v1029_v40  ;;  %v1155_v37 = vmul.f32 %v2712_v59, %v2447_v32  ;;  %vm1060_vm14 = vweird.f32 %v3126_v42  ;;  %v1129_v38 = vld [vmem:[%s3258_s25 + $0x28] sm:$0xff] }
 0x14c   : > { %v1053_v15 = vsel %vm1052_vm7, %v1920_v9, %v1049_v6  ;;  %v3249_v5 = vmul.f32 %v1090_v39, %v1033_v48  ;;  %v1059_v0 = vmul.f32 %v3182_v30, %v1058_v26  ;;  %vm1062_vm15 = vmor %vm1060_vm14, %vm1061_vm13  ;;  %v1154_v4 = vmul.f32 %v2736_v27, %v2444_v14  ;;  %v1126_v14 = vld [vmem:[%s3258_s25 + $0x10] sm:$0xff]  ;;  %v3846_v6 = vld [vmem:[#allocation63_spill] sm:$0xff] }
 0x14d   : > { %1331 = vperm.xlu2 %1862, %v3232_v46   ;;  %v3243_v56 = vmul.f32 %v1092_v35, %v1053_v15  ;;  %v1043_v10 = vsel %vm1042_vm12, %v1922_v24, %v1039_v41  ;;  %v1125_v24 = vld [vmem:[%s3258_s25 + $0x8] sm:$0xff]  ;;  %v1158_v59 = vmul.f32 %v2785_v62, %v2450_v7  ;;  %v1156_v19 = vmul.f32 %v2697_v22, %v2441_v58  ;;  %v3843_v62 = vld [vmem:[#allocation62_spill] sm:$0xff]  ;;  %v1130_v35 = vld [vmem:[%s3258_s25 + $0x30] sm:$0xff] }
 0x14e   : > { %v3251_v9 = vmul.f32 %v1091_v51, %v1043_v10  ;;  %v1063_v25 = vsel %vm1062_vm15, %v3182_v30, %v1059_v0  ;;  %v1185_v20 = vsub.f32 %v1125_v24, %v1155_v37  ;;  %v1184_v32 = vsub.f32 %v1124_v47, %v1154_v4  ;;  %v1128_v30 = vld [vmem:[%s3258_s25 + $0x20] sm:$0xff]  ;;  %v3847_v15 = vld [vmem:[#allocation65_spill] sm:$0xff]  ;;  %v1134_v48 = vld [vmem:[%s3258_s25 + $0x50] sm:$0xff] }
 0x14f   : > { %1336 = vperm.xlu1 %1861, %v3234_v44   ;;  %v3273_v60 = vmul.f32 %v1093_v34, %v1063_v25  ;;  %v1188_v27 = vsub.f32 %v1128_v30, %v1158_v59  ;;  %v1157_v36 = vmul.f32 %v3842_v63, %v2456_v55  ;;  %v1186_v23 = vsub.f32 %v1126_v14, %v1156_v19  ;;  %v1132_v10 = vld [vmem:[%s3258_s25 + $0x40] sm:$0xff]  ;;  %v1133_v24 = vld [vmem:[%s3258_s25 + $0x48] sm:$0xff]  ;;  %v3852_v30 = vld [vmem:[#allocation69_spill] sm:$0xff] }
 0x150   : > { %v1161_v8 = vmul.f32 %v3844_v21, %v3843_v62  ;;  %v1159_v58 = vmul.f32 %v2872_v3, %v3845_v16  ;;  %v1160_v17 = vmul.f32 %v2879_v53, %v3846_v6  ;;  %v1164_v26 = vmul.f32 %v2910_v13, %v3847_v15  ;;  %v3848_v3 = vld [vmem:[#allocation61_spill] sm:$0xff]  ;;  %v3849_v0 = vld [vmem:[#allocation66_spill] sm:$0xff]  ;;  %v3850_v13 = vld [vmem:[#allocation68_spill] sm:$0xff] }
 0x151   : > { %v1187_v7 = vsub.f32 %v1127_v45, %v1157_v36  ;;  %v1162_v39 = vmul.f32 %v2941_v28, %v3848_v3  ;;  %v1163_v53 = vmul.f32 %v2964_v29, %v3849_v0  ;;  %v1137_v4 = vld [vmem:[%s3258_s25 + $0x68] sm:$0xff]  ;;  %v3851_v28 = vld [vmem:[#allocation64_spill] sm:$0xff]  ;;  %v1135_v29 = vld [vmem:[%s3258_s25 + $0x58] sm:$0xff]  ;;  %v1166_v19 = vmul.f32 %v3019_v54, %v3852_v30 }
 0x152   : > { %1356 = vperm.xlu0 %1860, %v3243_v56   ;;  %v1191_v55 = vsub.f32 %v1131_v31, %v1161_v8  ;;  %v1189_v40 = vsub.f32 %v1129_v38, %v1159_v58  ;;  %v1190_v41 = vsub.f32 %v1130_v35, %v1160_v17  ;;  %v1194_v51 = vsub.f32 %v1134_v48, %v1164_v26  ;;  %v3853_v45 = vld [vmem:[#allocation71_spill] sm:$0xff]  ;;  %v1138_v54 = vld [vmem:[%s3258_s25 + $0x70] sm:$0xff]  ;;  %v1139_v58 = vld [vmem:[%s3258_s25 + $0x78] sm:$0xff] }
 0x153   : > { %v3278_v42 = vpop.permute.xlu2 %1226  ;;  %v1192_v25 = vsub.f32 %v1132_v10, %v1162_v39  ;;  %v1193_v34 = vsub.f32 %v1133_v24, %v1163_v53  ;;  %v1165_v47 = vmul.f32 %v2984_v57, %v3851_v28  ;;  %v1170_v57 = vmul.f32 %v3049_v33, %v3853_v45  ;;  %v3855_v8 = vld [vmem:[#allocation72_spill] sm:$0xff]  ;;  %v3856_v6 = vld [vmem:[#allocation74_spill] sm:$0xff]  ;;  %v1143_v35 = vld [vmem:[%s3258_s25 + $0x98] sm:$0xff] }
 0x154   : > { %v1169_v31 = vmul.f32 %v3076_v50, %v3855_v8  ;;  %v1173_v17 = vmul.f32 %v3111_v43, %v3856_v6  ;;  %v3858_v26 = vld [vmem:[#allocation75_spill] sm:$0xff]  ;;  %v1142_v3 = vld [vmem:[%s3258_s25 + $0x90] sm:$0xff]  ;;  %v3859_v0 = vld [vmem:[#allocation77_spill] sm:$0xff] }
 0x155   : > { %1346 = vperm.xlu2 %1862, %v3249_v5   ;;  %v1172_v48 = vmul.f32 %v3159_v1, %v3858_v26  ;;  %v1146_v53 = vld [vmem:[%s3258_s25 + $0xb0] sm:$0xff]  ;;  %v1145_v28 = vld [vmem:[%s3258_s25 + $0xa8] sm:$0xff] }
 0x156   : > { %v1199_v33 = vsub.f32 %v1139_v58, %v1169_v31  ;;  %v1203_v15 = vsub.f32 %v1143_v35, %v1173_v17  ;;  %v3866_v58 = vld [vmem:[#allocation79_spill] sm:$0xff]  ;;  %v3867_v6 = vld [vmem:[#allocation84_spill] sm:$0xff]  ;;  %v1151_v35 = vld [vmem:[%s3258_s25 + $0xd8] sm:$0xff] }
 0x157   : > { %1351 = vperm.xlu1 %1861, %v3251_v9   ;;  %v1202_v43 = vsub.f32 %v1142_v3, %v1172_v48  ;;  %v1181_v17 = vmul.f32 %v3251_v9, %v3867_v6  ;;  %v1153_v48 = vld [vmem:[%s3258_s25 + $0xe8] sm:$0xff] }
 0x15a   : > { %1431 = vperm.xlu0 %1860, %v1185_v20   ;;  %v1167_v20 = vmul.f32 %v2975_v52, %v3850_v13  ;;  %v1195_v52 = vsub.f32 %v1135_v29, %v1165_v47 }
 0x15c   : > { %v1197_v59 = vsub.f32 %v1137_v4, %v1167_v20  ;;  %v3861_v20 = vld [vmem:[#allocation78_spill] sm:$0xff] }
 0x15d   : > { %1361 = vperm.xlu2 %1862, %v3273_v60   ;;  %v1175_v4 = vmul.f32 %v3200_v11, %v3861_v20  ;;  %v1147_v11 = vld [vmem:[%s3258_s25 + $0xb8] sm:$0xff] }
 0x15f   : > { %1426 = vperm.xlu1 %1861, %v1184_v32   ;;  %v1205_v29 = vsub.f32 %v1145_v28, %v1175_v4 }
 0x162   : > { %1446 = vperm.xlu0 %1860, %v1188_v27   ;;  %v3292_v22 = vpop.permute.xlu2 %1231  ;;  %v1136_v27 = vld [vmem:[%s3258_s25 + $0x60] sm:$0xff] }
 0x163   : > { %v1196_v63 = vsub.f32 %v1136_v27, %v1166_v19  ;;  %v1149_v19 = vld [vmem:[%s3258_s25 + $0xc8] sm:$0xff]  ;;  %v3863_v27 = vld [vmem:[#allocation76_spill] sm:$0xff] }
 0x165   : > { %1436 = vperm.xlu2 %1862, %v1186_v23   ;;  %v1140_v23 = vld [vmem:[%s3258_s25 + $0x80] sm:$0xff] }
 0x166   : > { %v1200_v21 = vsub.f32 %v1140_v23, %v1170_v57  ;;  %v3864_v57 = vld [vmem:[#allocation81_spill] sm:$0xff] }
 0x167   : > { %1441 = vperm.xlu1 %1861, %v1187_v7   ;;  %v3854_v7 = vld [vmem:[#allocation67_spill] sm:$0xff]  ;;  %v1178_v23 = vmul.f32 %v3234_v44, %v3864_v57 }
 0x168   : > { %v1168_v62 = vmul.f32 %v3074_v49, %v3854_v7  ;;  %v1148_v7 = vld [vmem:[%s3258_s25 + $0xc0] sm:$0xff] }
 0x16a   : > { %1461 = vperm.xlu0 %1860, %v1191_v55   ;;  %v1198_v38 = vsub.f32 %v1138_v54, %v1168_v62  ;;  %v1208_v62 = vsub.f32 %v1148_v7, %v1178_v23 }
 0x16d   : > { %1451 = vperm.xlu2 %1862, %v1189_v40   ;;  %v3314_v32 = vpop.permute.xlu1 %1221  ;;  %v3857_v40 = vld [vmem:[#allocation70_spill] sm:$0xff] }
 0x16e   : > { %v1171_v50 = vmul.f32 %v3150_v12, %v3857_v40  ;;  %v1176_v12 = vmul.f32 %v3185_v18, %v3859_v0 }
 0x16f   : > { %1456 = vperm.xlu1 %1861, %v1190_v41   ;;  %v3306_v37 = vpop.permute.xlu2 %1241  ;;  %v3322_v36 = vpop.permute.xlu0 %1216  ;;  %v1141_v41 = vld [vmem:[%s3258_s25 + $0x88] sm:$0xff] }
 0x170   : > { %v1201_v39 = vsub.f32 %v1141_v41, %v1171_v50  ;;  %v1206_v13 = vsub.f32 %v1146_v53, %v1176_v12 }
 0x172   : > { %1476 = vperm.xlu0 %1860, %v1194_v51  }
 0x175   : > { %1466 = vperm.xlu2 %1862, %v1192_v25   ;;  %v3860_v25 = vld [vmem:[#allocation73_spill] sm:$0xff] }
 0x176   : > { %v1174_v1 = vmul.f32 %v3198_v61, %v3860_v25 }
 0x177   : > { %1471 = vperm.xlu1 %1861, %v1193_v34   ;;  %v1144_v34 = vld [vmem:[%s3258_s25 + $0xa0] sm:$0xff] }
 0x178   : > { %v3319_v14 = vpop.permute.xlu2 %1256  ;;  %v3332_v16 = vpop.permute.xlu1 %1236  ;;  %v1204_v47 = vsub.f32 %v1144_v34, %v1174_v1  ;;  %v1923_v1 = vld [vmem:[%s1970_s18 + $0x20] sm:$0xff]  ;;  %v1924_v34 = vld [vmem:[%s1970_s18 + $0x28] sm:$0xff] }
 0x17a   : > { %1491 = vperm.xlu0 %1860, %v1197_v59   ;;  %v3862_v59 = vld [vmem:[#allocation80_spill] sm:$0xff] }
 0x17b   : > { %v1179_v30 = vmul.f32 %v3221_v2, %v3862_v59 }
 0x17d   : > { %1481 = vperm.xlu2 %1862, %v1195_v52   ;;  %v1177_v52 = vmul.f32 %v3232_v46, %v3863_v27  ;;  %v1209_v45 = vsub.f32 %v1149_v19, %v1179_v30  ;;  %v1152_v46 = vld [vmem:[%s3258_s25 + $0xe0] sm:$0xff]  ;;  %v3869_v30 = vld [vmem:[#allocation9_spill] sm:$0xff] }
 0x17e   : > { %v1374_v19 = vmul.f32 %v3306_v37, %v3869_v30  ;;  %v3870_v27 = vld [vmem:[#allocation6_spill] sm:$0xff] }
 0x17f   : > { %1486 = vperm.xlu1 %1861, %v1196_v63   ;;  %v1207_v2 = vsub.f32 %v1147_v11, %v1177_v52  ;;  %v1375_v52 = vmul.f32 %v3306_v37, %v3870_v27  ;;  %v3879_v27 = vld [vmem:[#allocation21_spill] sm:$0xff] }
 0x180   : > { %v3335_v55 = vpop.permute.xlu2 %1271 }
 0x182   : > { %1506 = vperm.xlu0 %1860, %v1200_v21   ;;  %v3865_v21 = vld [vmem:[#allocation83_spill] sm:$0xff] }
 0x183   : > { %v1182_v8 = vmul.f32 %v3243_v56, %v3865_v21  ;;  %v1211_v56 = vsub.f32 %v1151_v35, %v1181_v17  ;;  %v3875_v35 = vld [vmem:[#allocation4_spill] sm:$0xff] }
 0x184   : > { %v3339_v49 = vpop.permute.xlu0 %1251 }
 0x185   : > { %1496 = vperm.xlu2 %1862, %v1198_v38   ;;  %v1180_v38 = vmul.f32 %v3249_v5, %v3866_v58  ;;  %v1212_v44 = vsub.f32 %v1152_v46, %v1182_v8  ;;  %v3868_v5 = vld [vmem:[#allocation82_spill] sm:$0xff]  ;;  %v3872_v8 = vld [vmem:[#allocation8_spill] sm:$0xff] }
 0x186   : > { %v1183_v26 = vmul.f32 %v3273_v60, %v3868_v5  ;;  %v1368_v60 = vmul.f32 %v1923_v1, %v3278_v42  ;;  %v1367_v46 = vmul.f32 %v3314_v32, %v3872_v8 }
 0x187   : > { %1501 = vperm.xlu1 %1861, %v1199_v33   ;;  %v1150_v33 = vld [vmem:[%s3258_s25 + $0xd0] sm:$0xff] }
 0x188   : > { %v3348_v10 = vpop.permute.xlu1 %1246  ;;  %v1210_v50 = vsub.f32 %v1150_v33, %v1180_v38  ;;  %v1213_v3 = vsub.f32 %v1153_v48, %v1183_v26  ;;  %v3873_v38 = vld [vmem:[#allocation15_spill] sm:$0xff]  ;;  %v3874_v33 = vld [vmem:[#allocation12_spill] sm:$0xff] }
 0x189   : > { %v1380_v37 = vmul.f32 %v3319_v14, %v3873_v38 }
 0x18a   : > { %1521 = vperm.xlu0 %1860, %v1203_v15  }
 0x18b   : > { %v3350_v51 = vpop.permute.xlu2 %1286 }
 0x18c   : > { %v3355_v24 = vpop.permute.xlu0 %1266 }
 0x18d   : > { %1511 = vperm.xlu2 %1862, %v1201_v39  }
 0x18f   : > { %1516 = vperm.xlu1 %1861, %v1202_v43  }
 0x192   : > { %1536 = vperm.xlu0 %1860, %v1206_v13   ;;  %v1369_v13 = vmul.f32 %v1924_v34, %v3278_v42 }
 0x194   : > { %v3363_v18 = vpop.permute.xlu1 %1261 }
 0x195   : > { %1526 = vperm.xlu2 %1862, %v1204_v47   ;;  %v3373_v63 = vpop.permute.xlu0 %1281 }
 0x197   : > { %1531 = vperm.xlu1 %1861, %v1205_v29   ;;  %v3368_v61 = vpop.permute.xlu2 %1301 }
 0x19a   : > { %1551 = vperm.xlu0 %1860, %v1209_v45  }
 0x19c   : > { %v3378_v54 = vpop.permute.xlu1 %1276 }
 0x19d   : > { %1541 = vperm.xlu2 %1862, %v1207_v2  }
 0x19f   : > { %1546 = vperm.xlu1 %1861, %v1208_v62   ;;  %v3383_v31 = vpop.permute.xlu2 %1316  ;;  %v3871_v62 = vld [vmem:[#allocation11_spill] sm:$0xff] }
 0x1a0   : > { %v1366_v21 = vmul.f32 %v3314_v32, %v3871_v62  ;;  %v3882_v62 = vld [vmem:[#allocation7_spill] sm:$0xff] }
 0x1a1   : > { %v3391_v40 = vpop.permute.xlu0 %1296 }
 0x1a2   : > { %1566 = vperm.xlu0 %1860, %v1212_v44   ;;  %v1381_v44 = vmul.f32 %v3319_v14, %v3874_v33 }
 0x1a4   : > { %v3395_v15 = vpop.permute.xlu1 %1291 }
 0x1a5   : > { %1556 = vperm.xlu2 %1862, %v1210_v50   ;;  %v1364_v50 = vmul.f32 %v3322_v36, %v3875_v35 }
 0x1a7   : > { %1561 = vperm.xlu1 %1861, %v1211_v56   ;;  %v3393_v41 = vpop.permute.xlu2 %1331  ;;  %v3876_v56 = vld [vmem:[#allocation5_spill] sm:$0xff] }
 0x1a8   : > { %v1365_v32 = vmul.f32 %v3322_v36, %v3876_v56  ;;  %v3878_v36 = vld [vmem:[#allocation3_spill] sm:$0xff] }
 0x1ac   : > { %v3400_v9 = vpop.permute.xlu0 %1311 }
 0x1ad   : > { %1571 = vperm.xlu2 %1862, %v1213_v3  }
 0x1af   : > { %v3402_v39 = vpop.permute.xlu2 %1346 }
 0x1b1   : > { %v3404_v43 = vpop.permute.xlu1 %1306 }
 0x1b4   : > { %v3406_v0 = vpop.permute.xlu0 %1326 }
 0x1b7   : > { %v3408_v12 = vpop.permute.xlu2 %1361 }
 0x1b9   : > { %v3410_v53 = vpop.permute.xlu1 %1321 }
 0x1bc   : > { %v3412_v25 = vpop.permute.xlu0 %1341 }
 0x1bf   : > { %v1437_v20 = vpop.permute.xlu2 %1436 }
 0x1c0   : > { %v1578_v4 = vadd.f32 %v1437_v20, %v1368_v60  ;;  %v1579_v28 = vadd.f32 %v1437_v20, %v1369_v13 }
 0x1c1   : > { %v3425_v47 = vpop.permute.xlu1 %1336 }
 0x1c2   : > { %v1638_v29 = vmax.f32 %v1578_v4, 0.0  ;;  %v1639_v59 = vmax.f32 %v1579_v28, 0.0  ;;  %v3877_v4 = vld [vmem:[#allocation2_spill] sm:$0xff] }
 0x1c3   : > { %v1372_v28 = vmul.f32 %v3332_v16, %v3877_v4 }
 0x1c4   : > { %1698 = vst [vmem:[%s3423_s28 + $0x20] sm:$0xff] %v1638_v29  ;;  %v3430_v42 = vpop.permute.xlu0 %1356  ;;  %v1373_v29 = vmul.f32 %v3332_v16, %v3878_v36 }
 0x1c5   : > { %1699 = vst.msk [vmem:[%s3423_s28 + $0x28] sm:$0xff] %vm283_vm0, %v1639_v59 }
 0x1c7   : > { %v1452_v11 = vpop.permute.xlu2 %1451 }
 0x1c8   : > { %v1584_v45 = vadd.f32 %v1452_v11, %v1374_v19  ;;  %v1585_v57 = vadd.f32 %v1452_v11, %v1375_v52  ;;  %v1386_v52 = vmul.f32 %v3335_v55, %v3879_v27  ;;  %v3880_v11 = vld [vmem:[#allocation18_spill] sm:$0xff] }
 0x1c9   : > { %v3436_v23 = vpop.permute.xlu1 %1351 }
 0x1ca   : > { %v1644_v7 = vmax.f32 %v1584_v45, 0.0  ;;  %v1645_v2 = vmax.f32 %v1585_v57, 0.0  ;;  %v1387_v45 = vmul.f32 %v3335_v55, %v3880_v11 }
 0x1cc   : > { %1704 = vst [vmem:[%s3423_s28 + $0x50] sm:$0xff] %v1644_v7  ;;  %v1432_v58 = vpop.permute.xlu0 %1431 }
 0x1cd   : > { %1705 = vst.msk [vmem:[%s3423_s28 + $0x58] sm:$0xff] %vm283_vm0, %v1645_v2  ;;  %v1576_v6 = vadd.f32 %v1432_v58, %v1366_v21  ;;  %v1577_v17 = vadd.f32 %v1432_v58, %v1367_v46  ;;  %v3881_v2 = vld [vmem:[#allocation10_spill] sm:$0xff]  ;;  %v1371_v21 = vmul.f32 %v3292_v22, %v3882_v62 }
 0x1ce   : > { %v1370_v16 = vmul.f32 %v3292_v22, %v3881_v2  ;;  %v3883_v22 = vld [vmem:[#allocation16_spill] sm:$0xff] }
 0x1cf   : > { %v1467_v5 = vpop.permute.xlu2 %1466  ;;  %v1636_v3 = vmax.f32 %v1576_v6, 0.0  ;;  %v1637_v1 = vmax.f32 %v1577_v17, 0.0  ;;  %v1378_v35 = vmul.f32 %v3339_v49, %v3883_v22 }
 0x1d0   : > { %v1590_v26 = vadd.f32 %v1467_v5, %v1380_v37  ;;  %v1591_v48 = vadd.f32 %v1467_v5, %v1381_v44 }
 0x1d1   : > { %v1427_v60 = vpop.permute.xlu1 %1426  ;;  %1696 = vst [vmem:[%s3423_s28 + $0x10] sm:$0xff] %v1636_v3 }
 0x1d2   : > { %v1650_v34 = vmax.f32 %v1590_v26, 0.0  ;;  %v1651_v14 = vmax.f32 %v1591_v48, 0.0  ;;  %v1574_v13 = vadd.f32 %v1427_v60, %v1364_v50  ;;  %v1575_v20 = vadd.f32 %v1427_v60, %v1365_v32  ;;  %1697 = vst.msk [vmem:[%s3423_s28 + $0x18] sm:$0xff] %vm283_vm0, %v1637_v1  ;;  %v3884_v50 = vld [vmem:[#allocation13_spill] sm:$0xff]  ;;  %v3885_v48 = vld [vmem:[#allocation27_spill] sm:$0xff]  ;;  %v3886_v1 = vld [vmem:[#allocation24_spill] sm:$0xff] }
 0x1d3   : > { %v1379_v56 = vmul.f32 %v3339_v49, %v3884_v50  ;;  %v1392_v3 = vmul.f32 %v3350_v51, %v3885_v48  ;;  %v1393_v60 = vmul.f32 %v3350_v51, %v3886_v1 }
 0x1d4   : > { %1710 = vst [vmem:[%s3423_s28 + $0x80] sm:$0xff] %v1650_v34  ;;  %v1634_v59 = vmax.f32 %v1574_v13, 0.0  ;;  %v1635_v30 = vmax.f32 %v1575_v20, 0.0  ;;  %v1447_v19 = vpop.permute.xlu0 %1446  ;;  %v3887_v13 = vld [vmem:[#allocation17_spill] sm:$0xff]  ;;  %v3888_v20 = vld [vmem:[#allocation14_spill] sm:$0xff] }
 0x1d5   : > { %1711 = vst.msk [vmem:[%s3423_s28 + $0x88] sm:$0xff] %vm283_vm0, %v1651_v14  ;;  %v1582_v57 = vadd.f32 %v1447_v19, %v1372_v28  ;;  %v1583_v7 = vadd.f32 %v1447_v19, %v1373_v29  ;;  %v1376_v49 = vmul.f32 %v3348_v10, %v3887_v13  ;;  %v1377_v4 = vmul.f32 %v3348_v10, %v3888_v20  ;;  %v3889_v10 = vld [vmem:[#allocation22_spill] sm:$0xff]  ;;  %v3897_v13 = vld [vmem:[#allocation39_spill] sm:$0xff]  ;;  %v3898_v20 = vld [vmem:[#allocation36_spill] sm:$0xff] }
 0x1d6   : > { %1694 = vst [vmem:[%s3423_s28] sm:$0xff] %v1634_v59 }
 0x1d7   : > { %1695 = vst.msk [vmem:[%s3423_s28 + $0x8] sm:$0xff] %vm283_vm0, %v1635_v30  ;;  %v1482_v8 = vpop.permute.xlu2 %1481  ;;  %v1642_v38 = vmax.f32 %v1582_v57, 0.0  ;;  %v1643_v55 = vmax.f32 %v1583_v7, 0.0  ;;  %v3890_v57 = vld [vmem:[#allocation19_spill] sm:$0xff] }
 0x1d8   : > { %v1596_v46 = vadd.f32 %v1482_v8, %v1386_v52  ;;  %v1597_v58 = vadd.f32 %v1482_v8, %v1387_v45  ;;  %v1384_v45 = vmul.f32 %v3355_v24, %v3889_v10  ;;  %v1385_v7 = vmul.f32 %v3355_v24, %v3890_v57 }
 0x1d9   : > { %v1442_v37 = vpop.permute.xlu1 %1441  ;;  %1702 = vst [vmem:[%s3423_s28 + $0x40] sm:$0xff] %v1642_v38 }
 0x1da   : > { %v1656_v33 = vmax.f32 %v1596_v46, 0.0  ;;  %v1657_v44 = vmax.f32 %v1597_v58, 0.0  ;;  %v1580_v6 = vadd.f32 %v1442_v37, %v1370_v16  ;;  %v1581_v17 = vadd.f32 %v1442_v37, %v1371_v21  ;;  %1703 = vst.msk [vmem:[%s3423_s28 + $0x48] sm:$0xff] %vm283_vm0, %v1643_v55  ;;  %v3891_v21 = vld [vmem:[#allocation33_spill] sm:$0xff]  ;;  %v3892_v46 = vld [vmem:[#allocation30_spill] sm:$0xff]  ;;  %v3893_v37 = vld [vmem:[#allocation23_spill] sm:$0xff] }
 0x1db   : > { %v1398_v8 = vmul.f32 %v3368_v61, %v3891_v21  ;;  %v1399_v58 = vmul.f32 %v3368_v61, %v3892_v46  ;;  %v1382_v24 = vmul.f32 %v3363_v18, %v3893_v37 }
 0x1dc   : > { %1716 = vst [vmem:[%s3423_s28 + $0xb0] sm:$0xff] %v1656_v33  ;;  %v1640_v32 = vmax.f32 %v1580_v6, 0.0  ;;  %v1641_v5 = vmax.f32 %v1581_v17, 0.0  ;;  %v1462_v26 = vpop.permute.xlu0 %1461  ;;  %v3894_v33 = vld [vmem:[#allocation20_spill] sm:$0xff] }
 0x1dd   : > { %1717 = vst.msk [vmem:[%s3423_s28 + $0xb8] sm:$0xff] %vm283_vm0, %v1657_v44  ;;  %v1588_v34 = vadd.f32 %v1462_v26, %v1378_v35  ;;  %v1589_v14 = vadd.f32 %v1462_v26, %v1379_v56  ;;  %v1383_v44 = vmul.f32 %v3363_v18, %v3894_v33  ;;  %v3895_v18 = vld [vmem:[#allocation28_spill] sm:$0xff] }
 0x1de   : > { %1700 = vst [vmem:[%s3423_s28 + $0x30] sm:$0xff] %v1640_v32  ;;  %v1390_v48 = vmul.f32 %v3373_v63, %v3895_v18 }
 0x1df   : > { %1701 = vst.msk [vmem:[%s3423_s28 + $0x38] sm:$0xff] %vm283_vm0, %v1641_v5  ;;  %v1497_v28 = vpop.permute.xlu2 %1496  ;;  %v1648_v59 = vmax.f32 %v1588_v34, 0.0  ;;  %v1649_v51 = vmax.f32 %v1589_v14, 0.0 }
 0x1e0   : > { %v1602_v36 = vadd.f32 %v1497_v28, %v1392_v3  ;;  %v1603_v29 = vadd.f32 %v1497_v28, %v1393_v60  ;;  %v3896_v3 = vld [vmem:[#allocation25_spill] sm:$0xff] }
 0x1e1   : > { %v1457_v30 = vpop.permute.xlu1 %1456  ;;  %1708 = vst [vmem:[%s3423_s28 + $0x70] sm:$0xff] %v1648_v59  ;;  %v1391_v1 = vmul.f32 %v3373_v63, %v3896_v3  ;;  %v3900_v59 = vld [vmem:[#allocation26_spill] sm:$0xff]  ;;  %v3908_v3 = vld [vmem:[#allocation37_spill] sm:$0xff] }
 0x1e2   : > { %v1662_v19 = vmax.f32 %v1602_v36, 0.0  ;;  %v1663_v27 = vmax.f32 %v1603_v29, 0.0  ;;  %v1586_v52 = vadd.f32 %v1457_v30, %v1376_v49  ;;  %v1587_v11 = vadd.f32 %v1457_v30, %v1377_v4  ;;  %1709 = vst.msk [vmem:[%s3423_s28 + $0x78] sm:$0xff] %vm283_vm0, %v1649_v51  ;;  %v3899_v29 = vld [vmem:[#allocation29_spill] sm:$0xff] }
 0x1e3   : > { %v1404_v49 = vmul.f32 %v3383_v31, %v3897_v13  ;;  %v1405_v4 = vmul.f32 %v3383_v31, %v3898_v20  ;;  %v1388_v63 = vmul.f32 %v3378_v54, %v3899_v29  ;;  %v1389_v51 = vmul.f32 %v3378_v54, %v3900_v59  ;;  %v3901_v54 = vld [vmem:[#allocation34_spill] sm:$0xff]  ;;  %v3909_v13 = vld [vmem:[#allocation51_spill] sm:$0xff]  ;;  %v3910_v20 = vld [vmem:[#allocation48_spill] sm:$0xff] }
 0x1e4   : > { %1722 = vst [vmem:[%s3423_s28 + $0xe0] sm:$0xff] %v1662_v19  ;;  %v1646_v2 = vmax.f32 %v1586_v52, 0.0  ;;  %v1647_v16 = vmax.f32 %v1587_v11, 0.0  ;;  %v1477_v62 = vpop.permute.xlu0 %1476  ;;  %v3911_v29 = vld [vmem:[#allocation41_spill] sm:$0xff] }
 0x1e5   : > { %1723 = vst.msk [vmem:[%s3423_s28 + $0xe8] sm:$0xff] %vm283_vm0, %v1663_v27  ;;  %v1594_v38 = vadd.f32 %v1477_v62, %v1384_v45  ;;  %v1595_v55 = vadd.f32 %v1477_v62, %v1385_v7 }
 0x1e6   : > { %1706 = vst [vmem:[%s3423_s28 + $0x60] sm:$0xff] %v1646_v2  ;;  %v1396_v2 = vmul.f32 %v3391_v40, %v3901_v54 }
 0x1e7   : > { %1707 = vst.msk [vmem:[%s3423_s28 + $0x68] sm:$0xff] %vm283_vm0, %v1647_v16  ;;  %v1512_v6 = vpop.permute.xlu2 %1511  ;;  %v1654_v35 = vmax.f32 %v1594_v38, 0.0  ;;  %v1655_v61 = vmax.f32 %v1595_v55, 0.0  ;;  %v3902_v16 = vld [vmem:[#allocation31_spill] sm:$0xff]  ;;  %v3904_v55 = vld [vmem:[#allocation42_spill] sm:$0xff] }
 0x1e8   : > { %v1608_v17 = vadd.f32 %v1512_v6, %v1398_v8  ;;  %v1609_v22 = vadd.f32 %v1512_v6, %v1399_v58  ;;  %v1397_v62 = vmul.f32 %v3391_v40, %v3902_v16  ;;  %v3903_v58 = vld [vmem:[#allocation45_spill] sm:$0xff]  ;;  %v1411_v37 = vmul.f32 %v3393_v41, %v3904_v55  ;;  %v3906_v6 = vld [vmem:[#allocation32_spill] sm:$0xff] }
 0x1e9   : > { %v1472_v50 = vpop.permute.xlu1 %1471  ;;  %1714 = vst [vmem:[%s3423_s28 + $0xa0] sm:$0xff] %v1654_v35  ;;  %v1410_v38 = vmul.f32 %v3393_v41, %v3903_v58 }
 0x1ea   : > { %v1668_v56 = vmax.f32 %v1608_v17, 0.0  ;;  %v1669_v32 = vmax.f32 %v1609_v22, 0.0  ;;  %v1592_v5 = vadd.f32 %v1472_v50, %v1382_v24  ;;  %v1593_v26 = vadd.f32 %v1472_v50, %v1383_v44  ;;  %1715 = vst.msk [vmem:[%s3423_s28 + $0xa8] sm:$0xff] %vm283_vm0, %v1655_v61  ;;  %v3905_v44 = vld [vmem:[#allocation35_spill] sm:$0xff] }
 0x1eb   : > { %v1394_v40 = vmul.f32 %v3395_v15, %v3905_v44  ;;  %v1395_v17 = vmul.f32 %v3395_v15, %v3906_v6  ;;  %v3907_v15 = vld [vmem:[#allocation40_spill] sm:$0xff] }
 0x1ec   : > { %1728 = vst [vmem:[%s3423_s28 + $0x110] sm:$0xff] %v1668_v56  ;;  %v1652_v60 = vmax.f32 %v1592_v5, 0.0  ;;  %v1653_v34 = vmax.f32 %v1593_v26, 0.0  ;;  %v1492_v14 = vpop.permute.xlu0 %1491 }
 0x1ed   : > { %1729 = vst.msk [vmem:[%s3423_s28 + $0x118] sm:$0xff] %vm283_vm0, %v1669_v32  ;;  %v1600_v28 = vadd.f32 %v1492_v14, %v1390_v48  ;;  %v1601_v36 = vadd.f32 %v1492_v14, %v1391_v1  ;;  %v1402_v48 = vmul.f32 %v3400_v9, %v3907_v15  ;;  %v1403_v1 = vmul.f32 %v3400_v9, %v3908_v3 }
 0x1ee   : > { %1712 = vst [vmem:[%s3423_s28 + $0x90] sm:$0xff] %v1652_v60  ;;  %v1400_v9 = vmul.f32 %v3404_v43, %v3911_v29  ;;  %v3924_v29 = vld [vmem:[#allocation55_spill] sm:$0xff] }
 0x1ef   : > { %1713 = vst.msk [vmem:[%s3423_s28 + $0x98] sm:$0xff] %vm283_vm0, %v1653_v34  ;;  %v1527_v30 = vpop.permute.xlu2 %1526  ;;  %v1660_v52 = vmax.f32 %v1600_v28, 0.0  ;;  %v1661_v31 = vmax.f32 %v1601_v36, 0.0 }
 0x1f0   : > { %v1614_v19 = vadd.f32 %v1527_v30, %v1404_v49  ;;  %v1615_v27 = vadd.f32 %v1527_v30, %v1405_v4  ;;  %v1416_v49 = vmul.f32 %v3402_v39, %v3909_v13  ;;  %v1417_v4 = vmul.f32 %v3402_v39, %v3910_v20 }
 0x1f1   : > { %v1487_v11 = vpop.permute.xlu1 %1486  ;;  %1720 = vst [vmem:[%s3423_s28 + $0xd0] sm:$0xff] %v1660_v52 }
 0x1f2   : > { %v1674_v10 = vmax.f32 %v1614_v19, 0.0  ;;  %v1675_v45 = vmax.f32 %v1615_v27, 0.0  ;;  %v1598_v57 = vadd.f32 %v1487_v11, %v1388_v63  ;;  %v1599_v7 = vadd.f32 %v1487_v11, %v1389_v51  ;;  %1721 = vst.msk [vmem:[%s3423_s28 + $0xd8] sm:$0xff] %vm283_vm0, %v1661_v31  ;;  %v3912_v63 = vld [vmem:[#allocation38_spill] sm:$0xff] }
 0x1f3   : > { %v1401_v59 = vmul.f32 %v3404_v43, %v3912_v63  ;;  %v3913_v43 = vld [vmem:[#allocation46_spill] sm:$0xff] }
 0x1f4   : > { %1734 = vst [vmem:[%s3423_s28 + $0x140] sm:$0xff] %v1674_v10  ;;  %v1658_v21 = vmax.f32 %v1598_v57, 0.0  ;;  %v1659_v8 = vmax.f32 %v1599_v7, 0.0  ;;  %v1507_v46 = vpop.permute.xlu0 %1506  ;;  %v1408_v57 = vmul.f32 %v3406_v0, %v3913_v43  ;;  %v3914_v7 = vld [vmem:[#allocation43_spill] sm:$0xff] }
 0x1f5   : > { %1735 = vst.msk [vmem:[%s3423_s28 + $0x148] sm:$0xff] %vm283_vm0, %v1675_v45  ;;  %v1606_v24 = vadd.f32 %v1507_v46, %v1396_v2  ;;  %v1607_v33 = vadd.f32 %v1507_v46, %v1397_v62  ;;  %v1409_v54 = vmul.f32 %v3406_v0, %v3914_v7  ;;  %v3916_v46 = vld [vmem:[#allocation54_spill] sm:$0xff] }
 0x1f6   : > { %1718 = vst [vmem:[%s3423_s28 + $0xc0] sm:$0xff] %v1658_v21  ;;  %v3915_v21 = vld [vmem:[#allocation57_spill] sm:$0xff]  ;;  %v1423_v58 = vmul.f32 %v3408_v12, %v3916_v46 }
 0x1f7   : > { %1719 = vst.msk [vmem:[%s3423_s28 + $0xc8] sm:$0xff] %vm283_vm0, %v1659_v8  ;;  %v1542_v22 = vpop.permute.xlu2 %1541  ;;  %v1666_v50 = vmax.f32 %v1606_v24, 0.0  ;;  %v1667_v41 = vmax.f32 %v1607_v33, 0.0  ;;  %v1422_v8 = vmul.f32 %v3408_v12, %v3915_v21  ;;  %v3918_v24 = vld [vmem:[#allocation44_spill] sm:$0xff] }
 0x1f8   : > { %v1620_v35 = vadd.f32 %v1542_v22, %v1410_v38  ;;  %v1621_v61 = vadd.f32 %v1542_v22, %v1411_v37  ;;  %v3917_v37 = vld [vmem:[#allocation47_spill] sm:$0xff]  ;;  %v1407_v33 = vmul.f32 %v3410_v53, %v3918_v24 }
 0x1f9   : > { %v1502_v56 = vpop.permute.xlu1 %1501  ;;  %1726 = vst [vmem:[%s3423_s28 + $0x100] sm:$0xff] %v1666_v50  ;;  %v1406_v0 = vmul.f32 %v3410_v53, %v3917_v37  ;;  %v3919_v53 = vld [vmem:[#allocation52_spill] sm:$0xff] }
 0x1fa   : > { %v1680_v32 = vmax.f32 %v1620_v35, 0.0  ;;  %v1681_v5 = vmax.f32 %v1621_v61, 0.0  ;;  %v1604_v26 = vadd.f32 %v1502_v56, %v1394_v40  ;;  %v1605_v18 = vadd.f32 %v1502_v56, %v1395_v17  ;;  %1727 = vst.msk [vmem:[%s3423_s28 + $0x108] sm:$0xff] %vm283_vm0, %v1667_v41 }
 0x1fb   : > { %v1414_v56 = vmul.f32 %v3412_v25, %v3919_v53 }
 0x1fc   : > { %1740 = vst [vmem:[%s3423_s28 + $0x170] sm:$0xff] %v1680_v32  ;;  %v1664_v60 = vmax.f32 %v1604_v26, 0.0  ;;  %v1665_v34 = vmax.f32 %v1605_v18, 0.0  ;;  %v1522_v14 = vpop.permute.xlu0 %1521  ;;  %v3920_v32 = vld [vmem:[#allocation49_spill] sm:$0xff] }
 0x1fd   : > { %1741 = vst.msk [vmem:[%s3423_s28 + $0x178] sm:$0xff] %vm283_vm0, %v1681_v5  ;;  %v1612_v28 = vadd.f32 %v1522_v14, %v1402_v48  ;;  %v1613_v36 = vadd.f32 %v1522_v14, %v1403_v1  ;;  %v1415_v5 = vmul.f32 %v3412_v25, %v3920_v32  ;;  %v3921_v1 = vld [vmem:[#allocation53_spill] sm:$0xff] }
 0x1fe   : > { %1724 = vst [vmem:[%s3423_s28 + $0xf0] sm:$0xff] %v1664_v60  ;;  %v1412_v60 = vmul.f32 %v3425_v47, %v3921_v1 }
 0x1ff   : > { %1725 = vst.msk [vmem:[%s3423_s28 + $0xf8] sm:$0xff] %vm283_vm0, %v1665_v34  ;;  %v1557_v51 = vpop.permute.xlu2 %1556  ;;  %v1672_v27 = vmax.f32 %v1612_v28, 0.0  ;;  %v1673_v39 = vmax.f32 %v1613_v36, 0.0  ;;  %v3922_v34 = vld [vmem:[#allocation50_spill] sm:$0xff] }
 0x200   : > { %v1626_v30 = vadd.f32 %v1557_v51, %v1416_v49  ;;  %v1627_v19 = vadd.f32 %v1557_v51, %v1417_v4  ;;  %v1413_v25 = vmul.f32 %v3425_v47, %v3922_v34  ;;  %v3923_v28 = vld [vmem:[#allocation58_spill] sm:$0xff] }
 0x201   : > { %v1517_v52 = vpop.permute.xlu1 %1516  ;;  %1732 = vst [vmem:[%s3423_s28 + $0x130] sm:$0xff] %v1672_v27  ;;  %v1420_v36 = vmul.f32 %v3430_v42, %v3923_v28 }
 0x202   : > { %v1686_v31 = vmax.f32 %v1626_v30, 0.0  ;;  %v1687_v11 = vmax.f32 %v1627_v19, 0.0  ;;  %v1610_v10 = vadd.f32 %v1517_v52, %v1400_v9  ;;  %v1611_v45 = vadd.f32 %v1517_v52, %v1401_v59  ;;  %1733 = vst.msk [vmem:[%s3423_s28 + $0x138] sm:$0xff] %vm283_vm0, %v1673_v39  ;;  %v3925_v19 = vld [vmem:[#allocation59_spill] sm:$0xff]  ;;  %v3926_v39 = vld [vmem:[#allocation56_spill] sm:$0xff] }
 0x203   : > { %v1421_v9 = vmul.f32 %v3430_v42, %v3924_v29  ;;  %v1418_v27 = vmul.f32 %v3436_v23, %v3925_v19  ;;  %v1419_v52 = vmul.f32 %v3436_v23, %v3926_v39 }
 0x204   : > { %1746 = vst [vmem:[%s3423_s28 + $0x1a0] sm:$0xff] %v1686_v31  ;;  %v1670_v2 = vmax.f32 %v1610_v10, 0.0  ;;  %v1671_v16 = vmax.f32 %v1611_v45, 0.0  ;;  %v1537_v62 = vpop.permute.xlu0 %1536 }
 0x205   : > { %1747 = vst.msk [vmem:[%s3423_s28 + $0x1a8] sm:$0xff] %vm283_vm0, %v1687_v11  ;;  %v1618_v38 = vadd.f32 %v1537_v62, %v1408_v57  ;;  %v1619_v55 = vadd.f32 %v1537_v62, %v1409_v54 }
 0x206   : > { %1730 = vst [vmem:[%s3423_s28 + $0x120] sm:$0xff] %v1670_v2 }
 0x207   : > { %1731 = vst.msk [vmem:[%s3423_s28 + $0x128] sm:$0xff] %vm283_vm0, %v1671_v16  ;;  %v1572_v44 = vpop.permute.xlu2 %1571  ;;  %v1678_v17 = vmax.f32 %v1618_v38, 0.0  ;;  %v1679_v12 = vmax.f32 %v1619_v55, 0.0 }
 0x208   : > { %v1632_v40 = vadd.f32 %v1572_v44, %v1422_v8  ;;  %v1633_v6 = vadd.f32 %v1572_v44, %v1423_v58 }
 0x209   : > { %v1532_v22 = vpop.permute.xlu1 %1531  ;;  %1738 = vst [vmem:[%s3423_s28 + $0x160] sm:$0xff] %v1678_v17 }
 0x20a   : > { %v1692_v35 = vmax.f32 %v1632_v40, 0.0  ;;  %v1693_v61 = vmax.f32 %v1633_v6, 0.0  ;;  %v1616_v50 = vadd.f32 %v1532_v22, %v1406_v0  ;;  %v1617_v41 = vadd.f32 %v1532_v22, %v1407_v33  ;;  %1739 = vst.msk [vmem:[%s3423_s28 + $0x168] sm:$0xff] %vm283_vm0, %v1679_v12 }
 0x20c   : > { %1752 = vst [vmem:[%s3423_s28 + $0x1d0] sm:$0xff] %v1692_v35  ;;  %v1676_v26 = vmax.f32 %v1616_v50, 0.0  ;;  %v1677_v18 = vmax.f32 %v1617_v41, 0.0  ;;  %v1552_v15 = vpop.permute.xlu0 %1551 }
 0x20d   : > { %1753 = vst.msk [vmem:[%s3423_s28 + $0x1d8] sm:$0xff] %vm283_vm0, %v1693_v61  ;;  %v1624_v48 = vadd.f32 %v1552_v15, %v1414_v56  ;;  %v1625_v3 = vadd.f32 %v1552_v15, %v1415_v5 }
 0x20e   : > { %1736 = vst [vmem:[%s3423_s28 + $0x150] sm:$0xff] %v1676_v26 }
 0x20f   : > { %1737 = vst.msk [vmem:[%s3423_s28 + $0x158] sm:$0xff] %vm283_vm0, %v1677_v18  ;;  %v1684_v14 = vmax.f32 %v1624_v48, 0.0  ;;  %v1685_v13 = vmax.f32 %v1625_v3, 0.0 }
 0x211   : > { %v1547_v49 = vpop.permute.xlu1 %1546  ;;  %1744 = vst [vmem:[%s3423_s28 + $0x190] sm:$0xff] %v1684_v14 }
 0x212   : > { %v1622_v20 = vadd.f32 %v1547_v49, %v1412_v60  ;;  %v1623_v4 = vadd.f32 %v1547_v49, %v1413_v25  ;;  %1745 = vst.msk [vmem:[%s3423_s28 + $0x198] sm:$0xff] %vm283_vm0, %v1685_v13 }
 0x214   : > { %v1682_v63 = vmax.f32 %v1622_v20, 0.0  ;;  %v1683_v59 = vmax.f32 %v1623_v4, 0.0  ;;  %v1567_v47 = vpop.permute.xlu0 %1566 }
 0x215   : > { %v1630_v51 = vadd.f32 %v1567_v47, %v1420_v36  ;;  %v1631_v30 = vadd.f32 %v1567_v47, %v1421_v9 }
 0x216   : > { %1742 = vst [vmem:[%s3423_s28 + $0x180] sm:$0xff] %v1682_v63 }
 0x217   : > { %1743 = vst.msk [vmem:[%s3423_s28 + $0x188] sm:$0xff] %vm283_vm0, %v1683_v59  ;;  %v1690_v31 = vmax.f32 %v1630_v51, 0.0  ;;  %v1691_v11 = vmax.f32 %v1631_v30, 0.0 }
 0x219   : > { %v1562_v42 = vpop.permute.xlu1 %1561  ;;  %1750 = vst [vmem:[%s3423_s28 + $0x1c0] sm:$0xff] %v1690_v31 }
 0x21a   : > { %v1628_v10 = vadd.f32 %v1562_v42, %v1418_v27  ;;  %v1629_v45 = vadd.f32 %v1562_v42, %v1419_v52  ;;  %1751 = vst.msk [vmem:[%s3423_s28 + $0x1c8] sm:$0xff] %vm283_vm0, %v1691_v11 }
 0x21c   : > { %v1688_v43 = vmax.f32 %v1628_v10, 0.0  ;;  %v1689_v57 = vmax.f32 %v1629_v45, 0.0 }
 0x21e   : > { %1748 = vst [vmem:[%s3423_s28 + $0x1b0] sm:$0xff] %v1688_v43 }
 0x21f   : > { %1749 = vst.msk [vmem:[%s3423_s28 + $0x1b8] sm:$0xff] %vm283_vm0, %v1689_v57 }
 0x220 PF: > { %s13_s12 = sadd.s32 1, %s1931_s12  }
 0x221   : > { %p10_p4 = scmp.ge.s32.totalorder %s13_s12, 6  }
 0x223   :  { %12 = sbr.rel (!%p10_p4) target bundleno = 1 (0x1), region = 68 }

</bundles_post_ra>
